<compile_context>
chip_gen: v7x
topology: tpu7x:2x2x1
jax: 0.10.0
libtpu: 0.0.40
codegen_flags: <defaults>
</compile_context>

<pallas_src>
import functools

import jax
import jax.numpy as jnp
from jax.experimental import pallas as pl
from jax.experimental.pallas import tpu as pltpu

BN_EPS = 1e-3
LANE = 128

# MXU operand dtype.  bf16 halves weight/activation DMA bytes and runs the MXU
# at full rate on v5e/v6e/v7x; accumulation and all elementwise math stay f32.
# Flip to jnp.float32 for ~1e-3 agreement with the f32 reference.
MXU_DTYPE = jnp.bfloat16


def _ceil_to(x, m):
    return (x + m - 1) // m * m


# ------------------------------ Pallas kernel ------------------------------ #

def _downblock_kernel(*refs, H, W, B, block_cfg):
    """Whole DownBlock for a block of B images.

    Flat channels-major layouts (spatial on the 128-lane axis, zero guards and
    lane padding baked in):
      x / xmid : (c, Lpad)      "wide" layout, rows -2..H+1 of W2=W+2 columns
      h1       : (cout, H1pad)  rows -1..H of W2 columns (+ zero tail)
      out/skip : (cout, Mr_pad) rows  0..H-1 of W2 columns (+ zero tail)
    A 3x3 conv = im2col of the 9 shifted slices (tap (a,b) -> start a*W2+b)
    into VMEM, then ONE (cout, 9*cin) x (9*cin, width) GEMM on the MXU.
    """
    W2 = W + 2
    MAXS = 2 * W2 + 2                 # largest tap shift == out-region offset
    nb = len(block_cfg)

    it = iter(refs)
    x_ref = next(it)                              # (B, cin0, Lpad)   MXU_DTYPE
    blk = []
    for (_cin, _cout, identity) in block_cfg:
        w1 = next(it); b1 = next(it)              # (cout, 9*cin), (cout, 1)
        w2 = next(it); b2 = next(it)              # (cout, 9*cout), (cout, 1)
        wsc = bsc = None
        if not identity:
            wsc = next(it); bsc = next(it)        # (cout, cin), (cout, 1)
        blk.append((w1, b1, w2, b2, wsc, bsc))
    mext_ref = next(it)                           # (1, Mcol)   h1 interior mask
    mout_ref = next(it)                           # (1, Mr_pad) out interior mask
    pmat_ref = next(it)                           # (Mr_pad, Np_pad) 0.25 taps
    skip_refs = [next(it) for _ in range(nb)]     # (B, cout, Mr_pad) f32
    pool_ref = next(it)                           # (B, cout, Np_pad) f32
    imcol = next(it)                              # (9*cmax, Mcol)    MXU_DTYPE
    h1buf = next(it)                              # (cout, H1pad)     MXU_DTYPE
    xmid = next(it)                               # (cout, Lpad)      MXU_DTYPE

    Mcol = imcol.shape[-1]
    Mr_pad = skip_refs[0].shape[-1]
    H1pad = h1buf.shape[-1]

    def conv3x3(read_slice, src_c, w_ref, b_ref, width):
        # im2col: pack the 9 shifted slices once, then a single K=9*src_c GEMM.
        for t in range(9):
            a, bb = divmod(t, 3)
            s = a * W2 + bb
            imcol[t * src_c:(t + 1) * src_c, 0:width] = read_slice(s, width)
        acc = jnp.dot(w_ref[...], imcol[0:9 * src_c, 0:width],
                      preferred_element_type=jnp.float32)
        return acc + b_ref[...]

    for b in range(B):
        prev = None                               # f32 (cout, Mr_pad)
        for bi, ((cin, cout, identity), (w1, b1, w2, b2, wsc, bsc)) in \
                enumerate(zip(block_cfg, blk)):
            if bi == 0:
                read1 = lambda s, wd: x_ref[b, :, s:s + wd]
            else:
                read1 = lambda s, wd: xmid[:, s:s + wd]

            # conv1 (+ folded eval-mode BN) -> SiLU, masked to the interior so
            # this buffer doubles as conv2's zero padding.
            pre = conv3x3(read1, cin, w1, b1, Mcol)
            sig = pl.reciprocal(1.0 + jnp.exp(-pre), approx=True)   # EUP slot
            h1 = (pre * sig) * mext_ref[...]
            h1buf[:, 0:Mcol] = h1.astype(h1buf.dtype)
            if H1pad > Mcol:
                h1buf[:, Mcol:] = jnp.zeros((cout, H1pad - Mcol), h1buf.dtype)

            # conv2: one GEMM over the zero-guarded h1 buffer.
            acc = conv3x3(lambda s, wd: h1buf[:, s:s + wd], cout, w2, b2,
                          Mr_pad)

            # shortcut (identity / 1x1 conv) + residual add, kept in f32.
            if identity:
                res = (x_ref[b, :, MAXS:MAXS + Mr_pad].astype(jnp.float32)
                       if bi == 0 else prev)
            else:
                src = (x_ref[b, :, MAXS:MAXS + Mr_pad]
                       if bi == 0 else prev.astype(wsc.dtype))
                res = jnp.dot(wsc[...], src,
                              preferred_element_type=jnp.float32) + bsc[...]
            out = (acc + res) * mout_ref[...]               # zero pads & tail
            skip_refs[bi][b] = out                          # lane-dense store
            prev = out

            if bi < nb - 1:
                # re-embed into the wide layout for the next block's conv1.
                xmid[...] = jnp.zeros(xmid.shape, xmid.dtype)
                xmid[:, MAXS:MAXS + Mr_pad] = out.astype(xmid.dtype)

        # fused 2x2 average pool: one lane-dense GEMM against constant 0.25 taps
        pool_ref[b] = jnp.dot(prev.astype(pmat_ref.dtype), pmat_ref[...],
                              preferred_element_type=jnp.float32)


# --------------------------------- wrapper ---------------------------------- #

def _make_pool_matrix(H, W, Mr_pad, Np_pad):
    """(Mr_pad, Np_pad) constant: pooled = out_region @ pmat (0.25 taps)."""
    W2 = W + 2
    Mr = H * W2
    wo = W // 2
    n = jnp.arange(Mr_pad)
    h = n // W2
    j = n % W2
    valid = (n < Mr) & (j >= 1) & (j <= W)
    wcol = jnp.clip(j - 1, 0, W - 1)
    q = (h // 2) * wo + (wcol // 2)
    sel = (q[:, None] == jnp.arange(Np_pad)[None, :]) & valid[:, None]
    return jnp.where(sel, 0.25, 0.0).astype(MXU_DTYPE)


def down_block_forward(x_nchw, params_list, images_per_step=None):
    """DownBlock forward.  Returns (pooled NCHW, [skip NCHW per block])."""
    x = x_nchw.astype(jnp.float32)
    N, cin0, H, W = x.shape
    cout = params_list[0]["b1"].shape[0]
    nb = len(params_list)

    W2 = W + 2
    Mr = H * W2
    Mext = (H + 2) * W2 + 2
    MAXS = 2 * W2 + 2
    Mr_pad = _ceil_to(Mr, LANE)
    Mcol = _ceil_to(Mext, LANE)                  # conv1 GEMM width (>= Mr_pad)
    H1pad = _ceil_to(MAXS + Mr_pad, LANE)        # conv2 tap slices in bounds
    Lpad = _ceil_to(max((H + 4) * W2 + 4, MAXS + Mcol), LANE)
    Np = (H // 2) * (W // 2)
    Np_pad = _ceil_to(Np, LANE)

    # images per grid step: keep >= 2 grid blocks (v7x megacore) but batch as
    # much work per ~0.35us grid step as possible.
    if images_per_step is None:
        B = N // 2 if (N >= 2 and N % 2 == 0) else 1
    else:
        B = images_per_step
    assert N % B == 0, "batch must be divisible by images_per_step"

    # wide input layout: zero-pad spatially (2,2),(1,1), flatten, add 2 guard
    # cells, pad the lane axis to Lpad (tail zeros double as slice guards).
    xw = jnp.pad(x, ((0, 0), (0, 0), (2, 2), (1, 1))).reshape(
        N, cin0, (H + 4) * W2)
    xw = jnp.pad(xw, ((0, 0), (0, 0), (2, Lpad - (H + 4) * W2 - 2)))
    xw = xw.astype(MXU_DTYPE)

    # interior masks (f32): zero on spatial pads AND on the 128-lane tails.
    m = jnp.arange(Mcol)
    q = m + (W2 - 1)
    row, col = q // W2, q % W2
    mask_ext = ((m < Mext) & (row >= 2) & (row <= H + 1)
                & (col >= 1) & (col <= W)).astype(jnp.float32)[None, :]
    n = jnp.arange(Mr_pad)
    coln = n % W2
    mask_out = ((n < Mr) & (coln >= 1) & (coln <= W)
                ).astype(jnp.float32)[None, :]

    pmat = _make_pool_matrix(H, W, Mr_pad, Np_pad)

    # ---- assemble operands (order must match the kernel's unpacking) ----
    inputs = [xw]
    in_specs = [pl.BlockSpec((B, cin0, Lpad), lambda i: (i, 0, 0))]
    block_cfg = []
    for bi, p in enumerate(params_list):
        cin_b = cin0 if bi == 0 else cout
        identity = p["wsc"] is None
        block_cfg.append((cin_b, cout, identity))
        inputs += [p["w1"], p["b1"], p["w2"], p["b2"]]
        in_specs += [pl.BlockSpec((cout, 9 * cin_b), lambda i: (0, 0)),
                     pl.BlockSpec((cout, 1), lambda i: (0, 0)),
                     pl.BlockSpec((cout, 9 * cout), lambda i: (0, 0)),
                     pl.BlockSpec((cout, 1), lambda i: (0, 0))]
        if not identity:
            inputs += [p["wsc"], p["bsc"]]
            in_specs += [pl.BlockSpec((cout, cin_b), lambda i: (0, 0)),
                         pl.BlockSpec((cout, 1), lambda i: (0, 0))]
    inputs += [mask_ext, mask_out, pmat]
    in_specs += [pl.BlockSpec((1, Mcol), lambda i: (0, 0)),
                 pl.BlockSpec((1, Mr_pad), lambda i: (0, 0)),
                 pl.BlockSpec((Mr_pad, Np_pad), lambda i: (0, 0))]

    out_shape = tuple(
        [jax.ShapeDtypeStruct((N, cout, Mr_pad), jnp.float32)] * nb
        + [jax.ShapeDtypeStruct((N, cout, Np_pad), jnp.float32)])
    out_specs = tuple(
        [pl.BlockSpec((B, cout, Mr_pad), lambda i: (i, 0, 0))] * nb
        + [pl.BlockSpec((B, cout, Np_pad), lambda i: (i, 0, 0))])

    cmax = max([cout] + [c for (c, _, _) in block_cfg])
    scratch_shapes = [
        pltpu.VMEM((9 * cmax, Mcol), MXU_DTYPE),     # im2col (reused per conv)
        pltpu.VMEM((cout, H1pad), MXU_DTYPE),        # h1 (conv2 input)
        pltpu.VMEM((cout, Lpad), MXU_DTYPE),         # inter-block wide layout
    ]

    kernel = functools.partial(_downblock_kernel, H=H, W=W, B=B,
                               block_cfg=tuple(block_cfg))

    outs = pl.pallas_call(
        kernel,
        out_shape=out_shape,
        grid_spec=pltpu.PrefetchScalarGridSpec(
            num_scalar_prefetch=0,
            grid=(N // B,),
            in_specs=in_specs,
            out_specs=out_specs,
            scratch_shapes=scratch_shapes),
        compiler_params=pltpu.CompilerParams(
            dimension_semantics=("parallel",),
            vmem_limit_bytes=32 * 1024 * 1024),
    )(*inputs)

    skips = [s[:, :, :Mr].reshape(N, cout, H, W2)[:, :, :, 1:W + 1]
             for s in outs[:nb]]
    pooled = outs[nb][:, :, :Np].reshape(N, cout, H // 2, W // 2)
    return pooled, skips


# ------------------------------ parameter init ------------------------------ #

def _init_conv(key, cin, cout, k):
    wk, bk = jax.random.split(key)
    bound = 1.0 / ((cin * k * k) ** 0.5)          # PyTorch-style uniform init
    w = jax.random.uniform(wk, (cout, cin, k, k), jnp.float32, -bound, bound)
    b = jax.random.uniform(bk, (cout,), jnp.float32, -bound, bound)
    return w, b


def make_resblock_params(key, cin, cout):
    k1, k2, k3 = jax.random.split(key, 3)
    w1, b1 = _init_conv(k1, cin, cout, 3)
    w2, b2 = _init_conv(k2, cout, cout, 3)
    # eval-mode BatchNorm2d (affine=False, fresh running stats mean=0, var=1)
    # is a pure per-input-channel scale -> fold into conv1's weights.
    invstd = 1.0 / jnp.sqrt(jnp.ones((cin,), jnp.float32) + BN_EPS)
    w1f = w1 * invstd[None, :, None, None]
    # (cout, cin, 3, 3) -> (cout, 3, 3, cin) -> (cout, 9*cin): column t*cin+i
    # matches im2col row t*cin+i (tap t = 3*a + b, input channel i).
    w1_mat = jnp.transpose(w1f, (0, 2, 3, 1)).reshape(cout, 9 * cin)
    w2_mat = jnp.transpose(w2, (0, 2, 3, 1)).reshape(cout, 9 * cout)
    if cin != cout:
        wsc_raw, bsc_raw = _init_conv(k3, cin, cout, 1)
        wsc = wsc_raw.reshape(cout, cin).astype(MXU_DTYPE)
        bsc = bsc_raw.reshape(cout, 1)
    else:
        wsc_raw = bsc_raw = wsc = bsc = None
    return dict(w1=w1_mat.astype(MXU_DTYPE), b1=b1.reshape(cout, 1),
                w2=w2_mat.astype(MXU_DTYPE), b2=b2.reshape(cout, 1),
                wsc=wsc, bsc=bsc,
                w1_raw=w1, b1_raw=b1, w2_raw=w2, b2_raw=b2,
                wsc_raw=wsc_raw, bsc_raw=bsc_raw)


# ------------------------- pure-JAX f32 reference --------------------------- #

def _ref_conv(x, w_oihw, b):
    out = jax.lax.conv_general_dilated(
        x, w_oihw, (1, 1), "SAME",
        dimension_numbers=("NCHW", "OIHW", "NCHW"))
    return out + b.reshape(1, -1, 1, 1)


def _ref_resblock(x, p):
    residual = x if p["wsc_raw"] is None else _ref_conv(x, p["wsc_raw"],
                                                        p["bsc_raw"])
    xb = x * (1.0 / jnp.sqrt(1.0 + BN_EPS))       # eval-mode BN (mean 0, var 1)
    h = _ref_conv(xb, p["w1_raw"], p["b1_raw"])
    h = h * jax.nn.sigmoid(h)
    return _ref_conv(h, p["w2_raw"], p["b2_raw"]) + residual


def _ref_downblock(x, params_list):
    skips = []
    for p in params_list:
        x = _ref_resblock(x, p)
        skips.append(x)
    n, c, h, w = x.shape
    pooled = x.reshape(n, c, h // 2, 2, w // 2, 2).mean(axis=(3, 5))
    return pooled, skips


# ----------------------------------- main ----------------------------------- #

if __name__ == "__main__":
    key = jax.random.PRNGKey(0)
    kx, kp0, kp1 = jax.random.split(key, 3)

    N, C_IN, C_OUT, H, W = 2, 4, 8, 16, 16
    x = jax.random.normal(kx, (N, C_IN, H, W), jnp.float32)      # NCHW

    params = [make_resblock_params(kp0, C_IN, C_OUT),            # block_depth=2
              make_resblock_params(kp1, C_OUT, C_OUT)]

    pooled, skips = down_block_forward(x, params)
    pooled = jax.block_until_ready(pooled)
    skips = [jax.block_until_ready(s) for s in skips]

    ref_pooled, ref_skips = _ref_downblock(x, params)
    ref_pooled = jax.block_until_ready(ref_pooled)

    atol = rtol = 5e-2 if MXU_DTYPE == jnp.bfloat16 else 1e-3

    assert pooled.shape == (N, C_OUT, H // 2, W // 2)
    assert jnp.allclose(pooled, ref_pooled, atol=atol, rtol=rtol), \
        "pooled output mismatch vs JAX reference"
    for s, rs in zip(skips, ref_skips):
        assert s.shape == rs.shape
        assert jnp.allclose(s, rs, atol=atol, rtol=rtol), \
            "skip output mismatch vs JAX reference"

    print("KERNEL_OK")
</pallas_src>

<mosaic_0001>
module attributes {stable_mosaic.version = 11 : i64} {
  func.func @_downblock_kernel(%arg0: i32, %arg1: memref<1x4x512xbf16, #tpu.memory_space<vmem>>, %arg2: memref<8x36xbf16, #tpu.memory_space<vmem>>, %arg3: memref<8x1xf32, #tpu.memory_space<vmem>>, %arg4: memref<8x72xbf16, #tpu.memory_space<vmem>>, %arg5: memref<8x1xf32, #tpu.memory_space<vmem>>, %arg6: memref<8x4xbf16, #tpu.memory_space<vmem>>, %arg7: memref<8x1xf32, #tpu.memory_space<vmem>>, %arg8: memref<8x72xbf16, #tpu.memory_space<vmem>>, %arg9: memref<8x1xf32, #tpu.memory_space<vmem>>, %arg10: memref<8x72xbf16, #tpu.memory_space<vmem>>, %arg11: memref<8x1xf32, #tpu.memory_space<vmem>>, %arg12: memref<1x384xf32, #tpu.memory_space<vmem>>, %arg13: memref<1x384xf32, #tpu.memory_space<vmem>>, %arg14: memref<384x128xbf16, #tpu.memory_space<vmem>>, %arg15: memref<1x8x384xf32, #tpu.memory_space<vmem>>, %arg16: memref<1x8x384xf32, #tpu.memory_space<vmem>>, %arg17: memref<1x8x128xf32, #tpu.memory_space<vmem>>, %arg18: memref<72x384xbf16, #tpu.memory_space<vmem>>, %arg19: memref<8x512xbf16, #tpu.memory_space<vmem>>, %arg20: memref<8x512xbf16, #tpu.memory_space<vmem>>) attributes {dimension_semantics = [#tpu.dimension_semantics<parallel>], iteration_bounds = array<i64: 2>, scalar_prefetch = 0 : i64, scratch_operands = 3 : i64, tpu.core_type = #tpu.core_type<tc>, window_params = [{transform_indices = @transform_0, window_bounds = array<i64: 1, 4, 512>}, {pipeline_mode = #tpu.pipeline_mode<synchronous>, transform_indices = @transform_1, window_bounds = array<i64: 8, 36>}, {pipeline_mode = #tpu.pipeline_mode<synchronous>, transform_indices = @transform_2, window_bounds = array<i64: 8, 1>}, {pipeline_mode = #tpu.pipeline_mode<synchronous>, transform_indices = @transform_3, window_bounds = array<i64: 8, 72>}, {pipeline_mode = #tpu.pipeline_mode<synchronous>, transform_indices = @transform_4, window_bounds = array<i64: 8, 1>}, {pipeline_mode = #tpu.pipeline_mode<synchronous>, transform_indices = @transform_5, window_bounds = array<i64: 8, 4>}, {pipeline_mode = #tpu.pipeline_mode<synchronous>, transform_indices = @transform_6, window_bounds = array<i64: 8, 1>}, {pipeline_mode = #tpu.pipeline_mode<synchronous>, transform_indices = @transform_7, window_bounds = array<i64: 8, 72>}, {pipeline_mode = #tpu.pipeline_mode<synchronous>, transform_indices = @transform_8, window_bounds = array<i64: 8, 1>}, {pipeline_mode = #tpu.pipeline_mode<synchronous>, transform_indices = @transform_9, window_bounds = array<i64: 8, 72>}, {pipeline_mode = #tpu.pipeline_mode<synchronous>, transform_indices = @transform_10, window_bounds = array<i64: 8, 1>}, {pipeline_mode = #tpu.pipeline_mode<synchronous>, transform_indices = @transform_11, window_bounds = array<i64: 1, 384>}, {pipeline_mode = #tpu.pipeline_mode<synchronous>, transform_indices = @transform_12, window_bounds = array<i64: 1, 384>}, {pipeline_mode = #tpu.pipeline_mode<synchronous>, transform_indices = @transform_13, window_bounds = array<i64: 384, 128>}, {transform_indices = @transform_14, window_bounds = array<i64: 1, 8, 384>}, {transform_indices = @transform_15, window_bounds = array<i64: 1, 8, 384>}, {transform_indices = @transform_16, window_bounds = array<i64: 1, 8, 128>}]} {
    %c0 = arith.constant 0 : index
    %c0_0 = arith.constant 0 : index
    %c0_1 = arith.constant 0 : index
    %0 = vector.load %arg1[%c0, %c0_0, %c0_1] : memref<1x4x512xbf16, #tpu.memory_space<vmem>>, vector<1x4x384xbf16>
    %1 = vector.shape_cast %0 : vector<1x4x384xbf16> to vector<4x384xbf16>
    %c0_2 = arith.constant 0 : index
    %c0_3 = arith.constant 0 : index
    %2 = vector.load %arg18[%c0_2, %c0_3] : memref<72x384xbf16, #tpu.memory_space<vmem>>, vector<4x384xbf16>
    tpu.vector_store %arg18[%c0_2, %c0_3], %1 {strides = array<i32>} : memref<72x384xbf16, #tpu.memory_space<vmem>>, vector<4x384xbf16>,
    %c0_4 = arith.constant 0 : index
    %c0_5 = arith.constant 0 : index
    %c1 = arith.constant 1 : index
    %3 = vector.load %arg1[%c0_4, %c0_5, %c1] : memref<1x4x512xbf16, #tpu.memory_space<vmem>>, vector<1x4x384xbf16>
    %4 = vector.shape_cast %3 : vector<1x4x384xbf16> to vector<4x384xbf16>
    %c4 = arith.constant 4 : index
    %c0_6 = arith.constant 0 : index
    %5 = vector.load %arg18[%c4, %c0_6] : memref<72x384xbf16, #tpu.memory_space<vmem>>, vector<4x384xbf16>
    tpu.vector_store %arg18[%c4, %c0_6], %4 {strides = array<i32>} : memref<72x384xbf16, #tpu.memory_space<vmem>>, vector<4x384xbf16>,
    %c0_7 = arith.constant 0 : index
    %c0_8 = arith.constant 0 : index
    %c2 = arith.constant 2 : index
    %6 = vector.load %arg1[%c0_7, %c0_8, %c2] : memref<1x4x512xbf16, #tpu.memory_space<vmem>>, vector<1x4x384xbf16>
    %7 = vector.shape_cast %6 : vector<1x4x384xbf16> to vector<4x384xbf16>
    %c8 = arith.constant 8 : index
    %c0_9 = arith.constant 0 : index
    %8 = vector.load %arg18[%c8, %c0_9] : memref<72x384xbf16, #tpu.memory_space<vmem>>, vector<4x384xbf16>
    tpu.vector_store %arg18[%c8, %c0_9], %7 {strides = array<i32>} : memref<72x384xbf16, #tpu.memory_space<vmem>>, vector<4x384xbf16>,
    %c0_10 = arith.constant 0 : index
    %c0_11 = arith.constant 0 : index
    %c18 = arith.constant 18 : index
    %9 = vector.load %arg1[%c0_10, %c0_11, %c18] : memref<1x4x512xbf16, #tpu.memory_space<vmem>>, vector<1x4x384xbf16>
    %10 = vector.shape_cast %9 : vector<1x4x384xbf16> to vector<4x384xbf16>
    %c12 = arith.constant 12 : index
    %c0_12 = arith.constant 0 : index
    %11 = vector.load %arg18[%c12, %c0_12] : memref<72x384xbf16, #tpu.memory_space<vmem>>, vector<4x384xbf16>
    tpu.vector_store %arg18[%c12, %c0_12], %10 {strides = array<i32>} : memref<72x384xbf16, #tpu.memory_space<vmem>>, vector<4x384xbf16>,
    %c0_13 = arith.constant 0 : index
    %c0_14 = arith.constant 0 : index
    %c19 = arith.constant 19 : index
    %12 = vector.load %arg1[%c0_13, %c0_14, %c19] : memref<1x4x512xbf16, #tpu.memory_space<vmem>>, vector<1x4x384xbf16>
    %13 = vector.shape_cast %12 : vector<1x4x384xbf16> to vector<4x384xbf16>
    %c16 = arith.constant 16 : index
    %c0_15 = arith.constant 0 : index
    %14 = vector.load %arg18[%c16, %c0_15] : memref<72x384xbf16, #tpu.memory_space<vmem>>, vector<4x384xbf16>
    tpu.vector_store %arg18[%c16, %c0_15], %13 {strides = array<i32>} : memref<72x384xbf16, #tpu.memory_space<vmem>>, vector<4x384xbf16>,
    %c0_16 = arith.constant 0 : index
    %c0_17 = arith.constant 0 : index
    %c20 = arith.constant 20 : index
    %15 = vector.load %arg1[%c0_16, %c0_17, %c20] : memref<1x4x512xbf16, #tpu.memory_space<vmem>>, vector<1x4x384xbf16>
    %16 = vector.shape_cast %15 : vector<1x4x384xbf16> to vector<4x384xbf16>
    %c20_18 = arith.constant 20 : index
    %c0_19 = arith.constant 0 : index
    %17 = vector.load %arg18[%c20_18, %c0_19] : memref<72x384xbf16, #tpu.memory_space<vmem>>, vector<4x384xbf16>
    tpu.vector_store %arg18[%c20_18, %c0_19], %16 {strides = array<i32>} : memref<72x384xbf16, #tpu.memory_space<vmem>>, vector<4x384xbf16>,
    %c0_20 = arith.constant 0 : index
    %c0_21 = arith.constant 0 : index
    %c36 = arith.constant 36 : index
    %18 = vector.load %arg1[%c0_20, %c0_21, %c36] : memref<1x4x512xbf16, #tpu.memory_space<vmem>>, vector<1x4x384xbf16>
    %19 = vector.shape_cast %18 : vector<1x4x384xbf16> to vector<4x384xbf16>
    %c24 = arith.constant 24 : index
    %c0_22 = arith.constant 0 : index
    %20 = vector.load %arg18[%c24, %c0_22] : memref<72x384xbf16, #tpu.memory_space<vmem>>, vector<4x384xbf16>
    tpu.vector_store %arg18[%c24, %c0_22], %19 {strides = array<i32>} : memref<72x384xbf16, #tpu.memory_space<vmem>>, vector<4x384xbf16>,
    %c0_23 = arith.constant 0 : index
    %c0_24 = arith.constant 0 : index
    %c37 = arith.constant 37 : index
    %21 = vector.load %arg1[%c0_23, %c0_24, %c37] : memref<1x4x512xbf16, #tpu.memory_space<vmem>>, vector<1x4x384xbf16>
    %22 = vector.shape_cast %21 : vector<1x4x384xbf16> to vector<4x384xbf16>
    %c28 = arith.constant 28 : index
    %c0_25 = arith.constant 0 : index
    %23 = vector.load %arg18[%c28, %c0_25] : memref<72x384xbf16, #tpu.memory_space<vmem>>, vector<4x384xbf16>
    tpu.vector_store %arg18[%c28, %c0_25], %22 {strides = array<i32>} : memref<72x384xbf16, #tpu.memory_space<vmem>>, vector<4x384xbf16>,
    %c0_26 = arith.constant 0 : index
    %c0_27 = arith.constant 0 : index
    %c38 = arith.constant 38 : index
    %24 = vector.load %arg1[%c0_26, %c0_27, %c38] : memref<1x4x512xbf16, #tpu.memory_space<vmem>>, vector<1x4x384xbf16>
    %25 = vector.shape_cast %24 : vector<1x4x384xbf16> to vector<4x384xbf16>
    %c32 = arith.constant 32 : index
    %c0_28 = arith.constant 0 : index
    %26 = vector.load %arg18[%c32, %c0_28] : memref<72x384xbf16, #tpu.memory_space<vmem>>, vector<4x384xbf16>
    tpu.vector_store %arg18[%c32, %c0_28], %25 {strides = array<i32>} : memref<72x384xbf16, #tpu.memory_space<vmem>>, vector<4x384xbf16>,
    %c0_29 = arith.constant 0 : index
    %c0_30 = arith.constant 0 : index
    %27 = vector.load %arg2[%c0_29, %c0_30] : memref<8x36xbf16, #tpu.memory_space<vmem>>, vector<8x36xbf16>
    %c0_31 = arith.constant 0 : index
    %c0_32 = arith.constant 0 : index
    %28 = vector.load %arg18[%c0_31, %c0_32] : memref<72x384xbf16, #tpu.memory_space<vmem>>, vector<36x384xbf16>
    %cst = arith.constant dense<0.000000e+00> : vector<8x384xf32>
    %29 = tpu.matmul %27, %28, %cst {dimension_numbers = #tpu.dot_dimension_numbers<[1], [0], [0], [1], [0, 0, 1, 1], [], []>} : vector<8x36xbf16>, vector<36x384xbf16>, vector<8x384xf32> -> vector<8x384xf32>
    %c0_33 = arith.constant 0 : index
    %c0_34 = arith.constant 0 : index
    %30 = vector.load %arg3[%c0_33, %c0_34] : memref<8x1xf32, #tpu.memory_space<vmem>>, vector<8x1xf32>
    %31 = vector.broadcast %30 : vector<8x1xf32> to vector<8x384xf32>
    %32 = arith.addf %29, %31 : vector<8x384xf32>
    %cst_35 = arith.constant 0.000000e+00 : f32
    %33 = vector.broadcast %cst_35 : f32 to vector<8x384xf32>
    %34 = arith.subf %33, %32 : vector<8x384xf32>
    %35 = math.exp %34 : vector<8x384xf32>
    %cst_36 = arith.constant 1.000000e+00 : f32
    %36 = vector.broadcast %cst_36 : f32 to vector<8x384xf32>
    %37 = arith.addf %36, %35 : vector<8x384xf32>
    %38 = tpu.reciprocal %37 {approx = true} : vector<8x384xf32> -> vector<8x384xf32>
    %39 = arith.mulf %32, %38 : vector<8x384xf32>
    %c0_37 = arith.constant 0 : index
    %c0_38 = arith.constant 0 : index
    %40 = vector.load %arg12[%c0_37, %c0_38] : memref<1x384xf32, #tpu.memory_space<vmem>>, vector<1x384xf32>
    %41 = vector.broadcast %40 : vector<1x384xf32> to vector<8x384xf32>
    %42 = arith.mulf %39, %41 : vector<8x384xf32>
    %43 = arith.truncf %42 : vector<8x384xf32> to vector<8x384xbf16>
    %c0_39 = arith.constant 0 : index
    %c0_40 = arith.constant 0 : index
    %44 = vector.load %arg19[%c0_39, %c0_40] : memref<8x512xbf16, #tpu.memory_space<vmem>>, vector<8x384xbf16>
    tpu.vector_store %arg19[%c0_39, %c0_40], %43 {strides = array<i32>} : memref<8x512xbf16, #tpu.memory_space<vmem>>, vector<8x384xbf16>,
    %cst_41 = arith.constant 0.000000e+00 : bf16
    %45 = vector.broadcast %cst_41 : bf16 to vector<8x128xbf16>
    %c0_42 = arith.constant 0 : index
    %c384 = arith.constant 384 : index
    %46 = vector.load %arg19[%c0_42, %c384] : memref<8x512xbf16, #tpu.memory_space<vmem>>, vector<8x128xbf16>
    tpu.vector_store %arg19[%c0_42, %c384], %45 {strides = array<i32>} : memref<8x512xbf16, #tpu.memory_space<vmem>>, vector<8x128xbf16>,
    %c0_43 = arith.constant 0 : index
    %c0_44 = arith.constant 0 : index
    %47 = vector.load %arg19[%c0_43, %c0_44] : memref<8x512xbf16, #tpu.memory_space<vmem>>, vector<8x384xbf16>
    %c0_45 = arith.constant 0 : index
    %c0_46 = arith.constant 0 : index
    %48 = vector.load %arg18[%c0_45, %c0_46] : memref<72x384xbf16, #tpu.memory_space<vmem>>, vector<8x384xbf16>
    tpu.vector_store %arg18[%c0_45, %c0_46], %47 {strides = array<i32>} : memref<72x384xbf16, #tpu.memory_space<vmem>>, vector<8x384xbf16>,
    %c0_47 = arith.constant 0 : index
    %c1_48 = arith.constant 1 : index
    %49 = vector.load %arg19[%c0_47, %c1_48] : memref<8x512xbf16, #tpu.memory_space<vmem>>, vector<8x384xbf16>
    %c8_49 = arith.constant 8 : index
    %c0_50 = arith.constant 0 : index
    %50 = vector.load %arg18[%c8_49, %c0_50] : memref<72x384xbf16, #tpu.memory_space<vmem>>, vector<8x384xbf16>
    tpu.vector_store %arg18[%c8_49, %c0_50], %49 {strides = array<i32>} : memref<72x384xbf16, #tpu.memory_space<vmem>>, vector<8x384xbf16>,
    %c0_51 = arith.constant 0 : index
    %c2_52 = arith.constant 2 : index
    %51 = vector.load %arg19[%c0_51, %c2_52] : memref<8x512xbf16, #tpu.memory_space<vmem>>, vector<8x384xbf16>
    %c16_53 = arith.constant 16 : index
    %c0_54 = arith.constant 0 : index
    %52 = vector.load %arg18[%c16_53, %c0_54] : memref<72x384xbf16, #tpu.memory_space<vmem>>, vector<8x384xbf16>
    tpu.vector_store %arg18[%c16_53, %c0_54], %51 {strides = array<i32>} : memref<72x384xbf16, #tpu.memory_space<vmem>>, vector<8x384xbf16>,
    %c0_55 = arith.constant 0 : index
    %c18_56 = arith.constant 18 : index
    %53 = vector.load %arg19[%c0_55, %c18_56] : memref<8x512xbf16, #tpu.memory_space<vmem>>, vector<8x384xbf16>
    %c24_57 = arith.constant 24 : index
    %c0_58 = arith.constant 0 : index
    %54 = vector.load %arg18[%c24_57, %c0_58] : memref<72x384xbf16, #tpu.memory_space<vmem>>, vector<8x384xbf16>
    tpu.vector_store %arg18[%c24_57, %c0_58], %53 {strides = array<i32>} : memref<72x384xbf16, #tpu.memory_space<vmem>>, vector<8x384xbf16>,
    %c0_59 = arith.constant 0 : index
    %c19_60 = arith.constant 19 : index
    %55 = vector.load %arg19[%c0_59, %c19_60] : memref<8x512xbf16, #tpu.memory_space<vmem>>, vector<8x384xbf16>
    %c32_61 = arith.constant 32 : index
    %c0_62 = arith.constant 0 : index
    %56 = vector.load %arg18[%c32_61, %c0_62] : memref<72x384xbf16, #tpu.memory_space<vmem>>, vector<8x384xbf16>
    tpu.vector_store %arg18[%c32_61, %c0_62], %55 {strides = array<i32>} : memref<72x384xbf16, #tpu.memory_space<vmem>>, vector<8x384xbf16>,
    %c0_63 = arith.constant 0 : index
    %c20_64 = arith.constant 20 : index
    %57 = vector.load %arg19[%c0_63, %c20_64] : memref<8x512xbf16, #tpu.memory_space<vmem>>, vector<8x384xbf16>
    %c40 = arith.constant 40 : index
    %c0_65 = arith.constant 0 : index
    %58 = vector.load %arg18[%c40, %c0_65] : memref<72x384xbf16, #tpu.memory_space<vmem>>, vector<8x384xbf16>
    tpu.vector_store %arg18[%c40, %c0_65], %57 {strides = array<i32>} : memref<72x384xbf16, #tpu.memory_space<vmem>>, vector<8x384xbf16>,
    %c0_66 = arith.constant 0 : index
    %c36_67 = arith.constant 36 : index
    %59 = vector.load %arg19[%c0_66, %c36_67] : memref<8x512xbf16, #tpu.memory_space<vmem>>, vector<8x384xbf16>
    %c48 = arith.constant 48 : index
    %c0_68 = arith.constant 0 : index
    %60 = vector.load %arg18[%c48, %c0_68] : memref<72x384xbf16, #tpu.memory_space<vmem>>, vector<8x384xbf16>
    tpu.vector_store %arg18[%c48, %c0_68], %59 {strides = array<i32>} : memref<72x384xbf16, #tpu.memory_space<vmem>>, vector<8x384xbf16>,
    %c0_69 = arith.constant 0 : index
    %c37_70 = arith.constant 37 : index
    %61 = vector.load %arg19[%c0_69, %c37_70] : memref<8x512xbf16, #tpu.memory_space<vmem>>, vector<8x384xbf16>
    %c56 = arith.constant 56 : index
    %c0_71 = arith.constant 0 : index
    %62 = vector.load %arg18[%c56, %c0_71] : memref<72x384xbf16, #tpu.memory_space<vmem>>, vector<8x384xbf16>
    tpu.vector_store %arg18[%c56, %c0_71], %61 {strides = array<i32>} : memref<72x384xbf16, #tpu.memory_space<vmem>>, vector<8x384xbf16>,
    %c0_72 = arith.constant 0 : index
    %c38_73 = arith.constant 38 : index
    %63 = vector.load %arg19[%c0_72, %c38_73] : memref<8x512xbf16, #tpu.memory_space<vmem>>, vector<8x384xbf16>
    %c64 = arith.constant 64 : index
    %c0_74 = arith.constant 0 : index
    %64 = vector.load %arg18[%c64, %c0_74] : memref<72x384xbf16, #tpu.memory_space<vmem>>, vector<8x384xbf16>
    tpu.vector_store %arg18[%c64, %c0_74], %63 {strides = array<i32>} : memref<72x384xbf16, #tpu.memory_space<vmem>>, vector<8x384xbf16>,
    %c0_75 = arith.constant 0 : index
    %c0_76 = arith.constant 0 : index
    %65 = vector.load %arg4[%c0_75, %c0_76] : memref<8x72xbf16, #tpu.memory_space<vmem>>, vector<8x72xbf16>
    %c0_77 = arith.constant 0 : index
    %c0_78 = arith.constant 0 : index
    %66 = vector.load %arg18[%c0_77, %c0_78] : memref<72x384xbf16, #tpu.memory_space<vmem>>, vector<72x384xbf16>
    %cst_79 = arith.constant dense<0.000000e+00> : vector<8x384xf32>
    %67 = tpu.matmul %65, %66, %cst_79 {dimension_numbers = #tpu.dot_dimension_numbers<[1], [0], [0], [1], [0, 0, 1, 1], [], []>} : vector<8x72xbf16>, vector<72x384xbf16>, vector<8x384xf32> -> vector<8x384xf32>
    %c0_80 = arith.constant 0 : index
    %c0_81 = arith.constant 0 : index
    %68 = vector.load %arg5[%c0_80, %c0_81] : memref<8x1xf32, #tpu.memory_space<vmem>>, vector<8x1xf32>
    %69 = vector.broadcast %68 : vector<8x1xf32> to vector<8x384xf32>
    %70 = arith.addf %67, %69 : vector<8x384xf32>
    %c0_82 = arith.constant 0 : index
    %c0_83 = arith.constant 0 : index
    %c38_84 = arith.constant 38 : index
    %71 = vector.load %arg1[%c0_82, %c0_83, %c38_84] : memref<1x4x512xbf16, #tpu.memory_space<vmem>>, vector<1x4x384xbf16>
    %72 = vector.shape_cast %71 : vector<1x4x384xbf16> to vector<4x384xbf16>
    %c0_85 = arith.constant 0 : index
    %c0_86 = arith.constant 0 : index
    %73 = vector.load %arg6[%c0_85, %c0_86] : memref<8x4xbf16, #tpu.memory_space<vmem>>, vector<8x4xbf16>
    %cst_87 = arith.constant dense<0.000000e+00> : vector<8x384xf32>
    %74 = tpu.matmul %73, %72, %cst_87 {dimension_numbers = #tpu.dot_dimension_numbers<[1], [0], [0], [1], [0, 0, 1, 1], [], []>} : vector<8x4xbf16>, vector<4x384xbf16>, vector<8x384xf32> -> vector<8x384xf32>
    %c0_88 = arith.constant 0 : index
    %c0_89 = arith.constant 0 : index
    %75 = vector.load %arg7[%c0_88, %c0_89] : memref<8x1xf32, #tpu.memory_space<vmem>>, vector<8x1xf32>
    %76 = vector.broadcast %75 : vector<8x1xf32> to vector<8x384xf32>
    %77 = arith.addf %74, %76 : vector<8x384xf32>
    %78 = arith.addf %70, %77 : vector<8x384xf32>
    %c0_90 = arith.constant 0 : index
    %c0_91 = arith.constant 0 : index
    %79 = vector.load %arg13[%c0_90, %c0_91] : memref<1x384xf32, #tpu.memory_space<vmem>>, vector<1x384xf32>
    %80 = vector.broadcast %79 : vector<1x384xf32> to vector<8x384xf32>
    %81 = arith.mulf %78, %80 : vector<8x384xf32>
    %c0_92 = arith.constant 0 : index
    %c0_93 = arith.constant 0 : index
    %c0_94 = arith.constant 0 : index
    %82 = vector.load %arg15[%c0_92, %c0_93, %c0_94] : memref<1x8x384xf32, #tpu.memory_space<vmem>>, vector<1x8x384xf32>
    %83 = vector.shape_cast %82 : vector<1x8x384xf32> to vector<8x384xf32>
    %84 = vector.shape_cast %81 : vector<8x384xf32> to vector<1x8x384xf32>
    tpu.vector_store %arg15[%c0_92, %c0_93, %c0_94], %84 {strides = array<i32>} : memref<1x8x384xf32, #tpu.memory_space<vmem>>, vector<1x8x384xf32>,
    %cst_95 = arith.constant 0.000000e+00 : bf16
    %85 = vector.broadcast %cst_95 : bf16 to vector<8x512xbf16>
    %c0_96 = arith.constant 0 : index
    %c0_97 = arith.constant 0 : index
    %86 = vector.load %arg20[%c0_96, %c0_97] : memref<8x512xbf16, #tpu.memory_space<vmem>>, vector<8x512xbf16>
    tpu.vector_store %arg20[%c0_96, %c0_97], %85 {strides = array<i32>} : memref<8x512xbf16, #tpu.memory_space<vmem>>, vector<8x512xbf16>,
    %87 = arith.truncf %81 : vector<8x384xf32> to vector<8x384xbf16>
    %c0_98 = arith.constant 0 : index
    %c38_99 = arith.constant 38 : index
    %88 = vector.load %arg20[%c0_98, %c38_99] : memref<8x512xbf16, #tpu.memory_space<vmem>>, vector<8x384xbf16>
    tpu.vector_store %arg20[%c0_98, %c38_99], %87 {strides = array<i32>} : memref<8x512xbf16, #tpu.memory_space<vmem>>, vector<8x384xbf16>,
    %c0_100 = arith.constant 0 : index
    %c0_101 = arith.constant 0 : index
    %89 = vector.load %arg20[%c0_100, %c0_101] : memref<8x512xbf16, #tpu.memory_space<vmem>>, vector<8x384xbf16>
    %c0_102 = arith.constant 0 : index
    %c0_103 = arith.constant 0 : index
    %90 = vector.load %arg18[%c0_102, %c0_103] : memref<72x384xbf16, #tpu.memory_space<vmem>>, vector<8x384xbf16>
    tpu.vector_store %arg18[%c0_102, %c0_103], %89 {strides = array<i32>} : memref<72x384xbf16, #tpu.memory_space<vmem>>, vector<8x384xbf16>,
    %c0_104 = arith.constant 0 : index
    %c1_105 = arith.constant 1 : index
    %91 = vector.load %arg20[%c0_104, %c1_105] : memref<8x512xbf16, #tpu.memory_space<vmem>>, vector<8x384xbf16>
    %c8_106 = arith.constant 8 : index
    %c0_107 = arith.constant 0 : index
    %92 = vector.load %arg18[%c8_106, %c0_107] : memref<72x384xbf16, #tpu.memory_space<vmem>>, vector<8x384xbf16>
    tpu.vector_store %arg18[%c8_106, %c0_107], %91 {strides = array<i32>} : memref<72x384xbf16, #tpu.memory_space<vmem>>, vector<8x384xbf16>,
    %c0_108 = arith.constant 0 : index
    %c2_109 = arith.constant 2 : index
    %93 = vector.load %arg20[%c0_108, %c2_109] : memref<8x512xbf16, #tpu.memory_space<vmem>>, vector<8x384xbf16>
    %c16_110 = arith.constant 16 : index
    %c0_111 = arith.constant 0 : index
    %94 = vector.load %arg18[%c16_110, %c0_111] : memref<72x384xbf16, #tpu.memory_space<vmem>>, vector<8x384xbf16>
    tpu.vector_store %arg18[%c16_110, %c0_111], %93 {strides = array<i32>} : memref<72x384xbf16, #tpu.memory_space<vmem>>, vector<8x384xbf16>,
    %c0_112 = arith.constant 0 : index
    %c18_113 = arith.constant 18 : index
    %95 = vector.load %arg20[%c0_112, %c18_113] : memref<8x512xbf16, #tpu.memory_space<vmem>>, vector<8x384xbf16>
    %c24_114 = arith.constant 24 : index
    %c0_115 = arith.constant 0 : index
    %96 = vector.load %arg18[%c24_114, %c0_115] : memref<72x384xbf16, #tpu.memory_space<vmem>>, vector<8x384xbf16>
    tpu.vector_store %arg18[%c24_114, %c0_115], %95 {strides = array<i32>} : memref<72x384xbf16, #tpu.memory_space<vmem>>, vector<8x384xbf16>,
    %c0_116 = arith.constant 0 : index
    %c19_117 = arith.constant 19 : index
    %97 = vector.load %arg20[%c0_116, %c19_117] : memref<8x512xbf16, #tpu.memory_space<vmem>>, vector<8x384xbf16>
    %c32_118 = arith.constant 32 : index
    %c0_119 = arith.constant 0 : index
    %98 = vector.load %arg18[%c32_118, %c0_119] : memref<72x384xbf16, #tpu.memory_space<vmem>>, vector<8x384xbf16>
    tpu.vector_store %arg18[%c32_118, %c0_119], %97 {strides = array<i32>} : memref<72x384xbf16, #tpu.memory_space<vmem>>, vector<8x384xbf16>,
    %c0_120 = arith.constant 0 : index
    %c20_121 = arith.constant 20 : index
    %99 = vector.load %arg20[%c0_120, %c20_121] : memref<8x512xbf16, #tpu.memory_space<vmem>>, vector<8x384xbf16>
    %c40_122 = arith.constant 40 : index
    %c0_123 = arith.constant 0 : index
    %100 = vector.load %arg18[%c40_122, %c0_123] : memref<72x384xbf16, #tpu.memory_space<vmem>>, vector<8x384xbf16>
    tpu.vector_store %arg18[%c40_122, %c0_123], %99 {strides = array<i32>} : memref<72x384xbf16, #tpu.memory_space<vmem>>, vector<8x384xbf16>,
    %c0_124 = arith.constant 0 : index
    %c36_125 = arith.constant 36 : index
    %101 = vector.load %arg20[%c0_124, %c36_125] : memref<8x512xbf16, #tpu.memory_space<vmem>>, vector<8x384xbf16>
    %c48_126 = arith.constant 48 : index
    %c0_127 = arith.constant 0 : index
    %102 = vector.load %arg18[%c48_126, %c0_127] : memref<72x384xbf16, #tpu.memory_space<vmem>>, vector<8x384xbf16>
    tpu.vector_store %arg18[%c48_126, %c0_127], %101 {strides = array<i32>} : memref<72x384xbf16, #tpu.memory_space<vmem>>, vector<8x384xbf16>,
    %c0_128 = arith.constant 0 : index
    %c37_129 = arith.constant 37 : index
    %103 = vector.load %arg20[%c0_128, %c37_129] : memref<8x512xbf16, #tpu.memory_space<vmem>>, vector<8x384xbf16>
    %c56_130 = arith.constant 56 : index
    %c0_131 = arith.constant 0 : index
    %104 = vector.load %arg18[%c56_130, %c0_131] : memref<72x384xbf16, #tpu.memory_space<vmem>>, vector<8x384xbf16>
    tpu.vector_store %arg18[%c56_130, %c0_131], %103 {strides = array<i32>} : memref<72x384xbf16, #tpu.memory_space<vmem>>, vector<8x384xbf16>,
    %c0_132 = arith.constant 0 : index
    %c38_133 = arith.constant 38 : index
    %105 = vector.load %arg20[%c0_132, %c38_133] : memref<8x512xbf16, #tpu.memory_space<vmem>>, vector<8x384xbf16>
    %c64_134 = arith.constant 64 : index
    %c0_135 = arith.constant 0 : index
    %106 = vector.load %arg18[%c64_134, %c0_135] : memref<72x384xbf16, #tpu.memory_space<vmem>>, vector<8x384xbf16>
    tpu.vector_store %arg18[%c64_134, %c0_135], %105 {strides = array<i32>} : memref<72x384xbf16, #tpu.memory_space<vmem>>, vector<8x384xbf16>,
    %c0_136 = arith.constant 0 : index
    %c0_137 = arith.constant 0 : index
    %107 = vector.load %arg8[%c0_136, %c0_137] : memref<8x72xbf16, #tpu.memory_space<vmem>>, vector<8x72xbf16>
    %c0_138 = arith.constant 0 : index
    %c0_139 = arith.constant 0 : index
    %108 = vector.load %arg18[%c0_138, %c0_139] : memref<72x384xbf16, #tpu.memory_space<vmem>>, vector<72x384xbf16>
    %cst_140 = arith.constant dense<0.000000e+00> : vector<8x384xf32>
    %109 = tpu.matmul %107, %108, %cst_140 {dimension_numbers = #tpu.dot_dimension_numbers<[1], [0], [0], [1], [0, 0, 1, 1], [], []>} : vector<8x72xbf16>, vector<72x384xbf16>, vector<8x384xf32> -> vector<8x384xf32>
    %c0_141 = arith.constant 0 : index
    %c0_142 = arith.constant 0 : index
    %110 = vector.load %arg9[%c0_141, %c0_142] : memref<8x1xf32, #tpu.memory_space<vmem>>, vector<8x1xf32>
    %111 = vector.broadcast %110 : vector<8x1xf32> to vector<8x384xf32>
    %112 = arith.addf %109, %111 : vector<8x384xf32>
    %cst_143 = arith.constant 0.000000e+00 : f32
    %113 = vector.broadcast %cst_143 : f32 to vector<8x384xf32>
    %114 = arith.subf %113, %112 : vector<8x384xf32>
    %115 = math.exp %114 : vector<8x384xf32>
    %cst_144 = arith.constant 1.000000e+00 : f32
    %116 = vector.broadcast %cst_144 : f32 to vector<8x384xf32>
    %117 = arith.addf %116, %115 : vector<8x384xf32>
    %118 = tpu.reciprocal %117 {approx = true} : vector<8x384xf32> -> vector<8x384xf32>
    %119 = arith.mulf %112, %118 : vector<8x384xf32>
    %c0_145 = arith.constant 0 : index
    %c0_146 = arith.constant 0 : index
    %120 = vector.load %arg12[%c0_145, %c0_146] : memref<1x384xf32, #tpu.memory_space<vmem>>, vector<1x384xf32>
    %121 = vector.broadcast %120 : vector<1x384xf32> to vector<8x384xf32>
    %122 = arith.mulf %119, %121 : vector<8x384xf32>
    %123 = arith.truncf %122 : vector<8x384xf32> to vector<8x384xbf16>
    %c0_147 = arith.constant 0 : index
    %c0_148 = arith.constant 0 : index
    %124 = vector.load %arg19[%c0_147, %c0_148] : memref<8x512xbf16, #tpu.memory_space<vmem>>, vector<8x384xbf16>
    tpu.vector_store %arg19[%c0_147, %c0_148], %123 {strides = array<i32>} : memref<8x512xbf16, #tpu.memory_space<vmem>>, vector<8x384xbf16>,
    %cst_149 = arith.constant 0.000000e+00 : bf16
    %125 = vector.broadcast %cst_149 : bf16 to vector<8x128xbf16>
    %c0_150 = arith.constant 0 : index
    %c384_151 = arith.constant 384 : index
    %126 = vector.load %arg19[%c0_150, %c384_151] : memref<8x512xbf16, #tpu.memory_space<vmem>>, vector<8x128xbf16>
    tpu.vector_store %arg19[%c0_150, %c384_151], %125 {strides = array<i32>} : memref<8x512xbf16, #tpu.memory_space<vmem>>, vector<8x128xbf16>,
    %c0_152 = arith.constant 0 : index
    %c0_153 = arith.constant 0 : index
    %127 = vector.load %arg19[%c0_152, %c0_153] : memref<8x512xbf16, #tpu.memory_space<vmem>>, vector<8x384xbf16>
    %c0_154 = arith.constant 0 : index
    %c0_155 = arith.constant 0 : index
    %128 = vector.load %arg18[%c0_154, %c0_155] : memref<72x384xbf16, #tpu.memory_space<vmem>>, vector<8x384xbf16>
    tpu.vector_store %arg18[%c0_154, %c0_155], %127 {strides = array<i32>} : memref<72x384xbf16, #tpu.memory_space<vmem>>, vector<8x384xbf16>,
    %c0_156 = arith.constant 0 : index
    %c1_157 = arith.constant 1 : index
    %129 = vector.load %arg19[%c0_156, %c1_157] : memref<8x512xbf16, #tpu.memory_space<vmem>>, vector<8x384xbf16>
    %c8_158 = arith.constant 8 : index
    %c0_159 = arith.constant 0 : index
    %130 = vector.load %arg18[%c8_158, %c0_159] : memref<72x384xbf16, #tpu.memory_space<vmem>>, vector<8x384xbf16>
    tpu.vector_store %arg18[%c8_158, %c0_159], %129 {strides = array<i32>} : memref<72x384xbf16, #tpu.memory_space<vmem>>, vector<8x384xbf16>,
    %c0_160 = arith.constant 0 : index
    %c2_161 = arith.constant 2 : index
    %131 = vector.load %arg19[%c0_160, %c2_161] : memref<8x512xbf16, #tpu.memory_space<vmem>>, vector<8x384xbf16>
    %c16_162 = arith.constant 16 : index
    %c0_163 = arith.constant 0 : index
    %132 = vector.load %arg18[%c16_162, %c0_163] : memref<72x384xbf16, #tpu.memory_space<vmem>>, vector<8x384xbf16>
    tpu.vector_store %arg18[%c16_162, %c0_163], %131 {strides = array<i32>} : memref<72x384xbf16, #tpu.memory_space<vmem>>, vector<8x384xbf16>,
    %c0_164 = arith.constant 0 : index
    %c18_165 = arith.constant 18 : index
    %133 = vector.load %arg19[%c0_164, %c18_165] : memref<8x512xbf16, #tpu.memory_space<vmem>>, vector<8x384xbf16>
    %c24_166 = arith.constant 24 : index
    %c0_167 = arith.constant 0 : index
    %134 = vector.load %arg18[%c24_166, %c0_167] : memref<72x384xbf16, #tpu.memory_space<vmem>>, vector<8x384xbf16>
    tpu.vector_store %arg18[%c24_166, %c0_167], %133 {strides = array<i32>} : memref<72x384xbf16, #tpu.memory_space<vmem>>, vector<8x384xbf16>,
    %c0_168 = arith.constant 0 : index
    %c19_169 = arith.constant 19 : index
    %135 = vector.load %arg19[%c0_168, %c19_169] : memref<8x512xbf16, #tpu.memory_space<vmem>>, vector<8x384xbf16>
    %c32_170 = arith.constant 32 : index
    %c0_171 = arith.constant 0 : index
    %136 = vector.load %arg18[%c32_170, %c0_171] : memref<72x384xbf16, #tpu.memory_space<vmem>>, vector<8x384xbf16>
    tpu.vector_store %arg18[%c32_170, %c0_171], %135 {strides = array<i32>} : memref<72x384xbf16, #tpu.memory_space<vmem>>, vector<8x384xbf16>,
    %c0_172 = arith.constant 0 : index
    %c20_173 = arith.constant 20 : index
    %137 = vector.load %arg19[%c0_172, %c20_173] : memref<8x512xbf16, #tpu.memory_space<vmem>>, vector<8x384xbf16>
    %c40_174 = arith.constant 40 : index
    %c0_175 = arith.constant 0 : index
    %138 = vector.load %arg18[%c40_174, %c0_175] : memref<72x384xbf16, #tpu.memory_space<vmem>>, vector<8x384xbf16>
    tpu.vector_store %arg18[%c40_174, %c0_175], %137 {strides = array<i32>} : memref<72x384xbf16, #tpu.memory_space<vmem>>, vector<8x384xbf16>,
    %c0_176 = arith.constant 0 : index
    %c36_177 = arith.constant 36 : index
    %139 = vector.load %arg19[%c0_176, %c36_177] : memref<8x512xbf16, #tpu.memory_space<vmem>>, vector<8x384xbf16>
    %c48_178 = arith.constant 48 : index
    %c0_179 = arith.constant 0 : index
    %140 = vector.load %arg18[%c48_178, %c0_179] : memref<72x384xbf16, #tpu.memory_space<vmem>>, vector<8x384xbf16>
    tpu.vector_store %arg18[%c48_178, %c0_179], %139 {strides = array<i32>} : memref<72x384xbf16, #tpu.memory_space<vmem>>, vector<8x384xbf16>,
    %c0_180 = arith.constant 0 : index
    %c37_181 = arith.constant 37 : index
    %141 = vector.load %arg19[%c0_180, %c37_181] : memref<8x512xbf16, #tpu.memory_space<vmem>>, vector<8x384xbf16>
    %c56_182 = arith.constant 56 : index
    %c0_183 = arith.constant 0 : index
    %142 = vector.load %arg18[%c56_182, %c0_183] : memref<72x384xbf16, #tpu.memory_space<vmem>>, vector<8x384xbf16>
    tpu.vector_store %arg18[%c56_182, %c0_183], %141 {strides = array<i32>} : memref<72x384xbf16, #tpu.memory_space<vmem>>, vector<8x384xbf16>,
    %c0_184 = arith.constant 0 : index
    %c38_185 = arith.constant 38 : index
    %143 = vector.load %arg19[%c0_184, %c38_185] : memref<8x512xbf16, #tpu.memory_space<vmem>>, vector<8x384xbf16>
    %c64_186 = arith.constant 64 : index
    %c0_187 = arith.constant 0 : index
    %144 = vector.load %arg18[%c64_186, %c0_187] : memref<72x384xbf16, #tpu.memory_space<vmem>>, vector<8x384xbf16>
    tpu.vector_store %arg18[%c64_186, %c0_187], %143 {strides = array<i32>} : memref<72x384xbf16, #tpu.memory_space<vmem>>, vector<8x384xbf16>,
    %c0_188 = arith.constant 0 : index
    %c0_189 = arith.constant 0 : index
    %145 = vector.load %arg10[%c0_188, %c0_189] : memref<8x72xbf16, #tpu.memory_space<vmem>>, vector<8x72xbf16>
    %c0_190 = arith.constant 0 : index
    %c0_191 = arith.constant 0 : index
    %146 = vector.load %arg18[%c0_190, %c0_191] : memref<72x384xbf16, #tpu.memory_space<vmem>>, vector<72x384xbf16>
    %cst_192 = arith.constant dense<0.000000e+00> : vector<8x384xf32>
    %147 = tpu.matmul %145, %146, %cst_192 {dimension_numbers = #tpu.dot_dimension_numbers<[1], [0], [0], [1], [0, 0, 1, 1], [], []>} : vector<8x72xbf16>, vector<72x384xbf16>, vector<8x384xf32> -> vector<8x384xf32>
    %c0_193 = arith.constant 0 : index
    %c0_194 = arith.constant 0 : index
    %148 = vector.load %arg11[%c0_193, %c0_194] : memref<8x1xf32, #tpu.memory_space<vmem>>, vector<8x1xf32>
    %149 = vector.broadcast %148 : vector<8x1xf32> to vector<8x384xf32>
    %150 = arith.addf %147, %149 : vector<8x384xf32>
    %151 = arith.addf %150, %81 : vector<8x384xf32>
    %c0_195 = arith.constant 0 : index
    %c0_196 = arith.constant 0 : index
    %152 = vector.load %arg13[%c0_195, %c0_196] : memref<1x384xf32, #tpu.memory_space<vmem>>, vector<1x384xf32>
    %153 = vector.broadcast %152 : vector<1x384xf32> to vector<8x384xf32>
    %154 = arith.mulf %151, %153 : vector<8x384xf32>
    %c0_197 = arith.constant 0 : index
    %c0_198 = arith.constant 0 : index
    %c0_199 = arith.constant 0 : index
    %155 = vector.load %arg16[%c0_197, %c0_198, %c0_199] : memref<1x8x384xf32, #tpu.memory_space<vmem>>, vector<1x8x384xf32>
    %156 = vector.shape_cast %155 : vector<1x8x384xf32> to vector<8x384xf32>
    %157 = vector.shape_cast %154 : vector<8x384xf32> to vector<1x8x384xf32>
    tpu.vector_store %arg16[%c0_197, %c0_198, %c0_199], %157 {strides = array<i32>} : memref<1x8x384xf32, #tpu.memory_space<vmem>>, vector<1x8x384xf32>,
    %158 = arith.truncf %154 : vector<8x384xf32> to vector<8x384xbf16>
    %c0_200 = arith.constant 0 : index
    %c0_201 = arith.constant 0 : index
    %159 = vector.load %arg14[%c0_200, %c0_201] : memref<384x128xbf16, #tpu.memory_space<vmem>>, vector<384x128xbf16>
    %cst_202 = arith.constant dense<0.000000e+00> : vector<8x128xf32>
    %160 = tpu.matmul %158, %159, %cst_202 {dimension_numbers = #tpu.dot_dimension_numbers<[1], [0], [0], [1], [0, 0, 1, 1], [], []>} : vector<8x384xbf16>, vector<384x128xbf16>, vector<8x128xf32> -> vector<8x128xf32>
    %c0_203 = arith.constant 0 : index
    %c0_204 = arith.constant 0 : index
    %c0_205 = arith.constant 0 : index
    %161 = vector.load %arg17[%c0_203, %c0_204, %c0_205] : memref<1x8x128xf32, #tpu.memory_space<vmem>>, vector<1x8x128xf32>
    %162 = vector.shape_cast %161 : vector<1x8x128xf32> to vector<8x128xf32>
    %163 = vector.shape_cast %160 : vector<8x128xf32> to vector<1x8x128xf32>
    tpu.vector_store %arg17[%c0_203, %c0_204, %c0_205], %163 {strides = array<i32>} : memref<1x8x128xf32, #tpu.memory_space<vmem>>, vector<1x8x128xf32>,
    return
  }
  func.func @transform_0(%arg0: i32) -> (i32, i32, i32) {
    %c0_i32 = arith.constant 0 : i32
    %c0_i32_0 = arith.constant 0 : i32
    %c0_i32_1 = arith.constant 0 : i32
    return %arg0, %c0_i32, %c0_i32_0 : i32, i32, i32
  }
  func.func @transform_1(%arg0: i32) -> (i32, i32) {
    %c0_i32 = arith.constant 0 : i32
    %c0_i32_0 = arith.constant 0 : i32
    %c0_i32_1 = arith.constant 0 : i32
    return %c0_i32, %c0_i32_0 : i32, i32
  }
  func.func @transform_2(%arg0: i32) -> (i32, i32) {
    %c0_i32 = arith.constant 0 : i32
    %c0_i32_0 = arith.constant 0 : i32
    %c0_i32_1 = arith.constant 0 : i32
    return %c0_i32, %c0_i32_0 : i32, i32
  }
  func.func @transform_3(%arg0: i32) -> (i32, i32) {
    %c0_i32 = arith.constant 0 : i32
    %c0_i32_0 = arith.constant 0 : i32
    %c0_i32_1 = arith.constant 0 : i32
    return %c0_i32, %c0_i32_0 : i32, i32
  }
  func.func @transform_4(%arg0: i32) -> (i32, i32) {
    %c0_i32 = arith.constant 0 : i32
    %c0_i32_0 = arith.constant 0 : i32
    %c0_i32_1 = arith.constant 0 : i32
    return %c0_i32, %c0_i32_0 : i32, i32
  }
  func.func @transform_5(%arg0: i32) -> (i32, i32) {
    %c0_i32 = arith.constant 0 : i32
    %c0_i32_0 = arith.constant 0 : i32
    %c0_i32_1 = arith.constant 0 : i32
    return %c0_i32, %c0_i32_0 : i32, i32
  }
  func.func @transform_6(%arg0: i32) -> (i32, i32) {
    %c0_i32 = arith.constant 0 : i32
    %c0_i32_0 = arith.constant 0 : i32
    %c0_i32_1 = arith.constant 0 : i32
    return %c0_i32, %c0_i32_0 : i32, i32
  }
  func.func @transform_7(%arg0: i32) -> (i32, i32) {
    %c0_i32 = arith.constant 0 : i32
    %c0_i32_0 = arith.constant 0 : i32
    %c0_i32_1 = arith.constant 0 : i32
    return %c0_i32, %c0_i32_0 : i32, i32
  }
  func.func @transform_8(%arg0: i32) -> (i32, i32) {
    %c0_i32 = arith.constant 0 : i32
    %c0_i32_0 = arith.constant 0 : i32
    %c0_i32_1 = arith.constant 0 : i32
    return %c0_i32, %c0_i32_0 : i32, i32
  }
  func.func @transform_9(%arg0: i32) -> (i32, i32) {
    %c0_i32 = arith.constant 0 : i32
    %c0_i32_0 = arith.constant 0 : i32
    %c0_i32_1 = arith.constant 0 : i32
    return %c0_i32, %c0_i32_0 : i32, i32
  }
  func.func @transform_10(%arg0: i32) -> (i32, i32) {
    %c0_i32 = arith.constant 0 : i32
    %c0_i32_0 = arith.constant 0 : i32
    %c0_i32_1 = arith.constant 0 : i32
    return %c0_i32, %c0_i32_0 : i32, i32
  }
  func.func @transform_11(%arg0: i32) -> (i32, i32) {
    %c0_i32 = arith.constant 0 : i32
    %c0_i32_0 = arith.constant 0 : i32
    %c0_i32_1 = arith.constant 0 : i32
    return %c0_i32, %c0_i32_0 : i32, i32
  }
  func.func @transform_12(%arg0: i32) -> (i32, i32) {
    %c0_i32 = arith.constant 0 : i32
    %c0_i32_0 = arith.constant 0 : i32
    %c0_i32_1 = arith.constant 0 : i32
    return %c0_i32, %c0_i32_0 : i32, i32
  }
  func.func @transform_13(%arg0: i32) -> (i32, i32) {
    %c0_i32 = arith.constant 0 : i32
    %c0_i32_0 = arith.constant 0 : i32
    %c0_i32_1 = arith.constant 0 : i32
    return %c0_i32, %c0_i32_0 : i32, i32
  }
  func.func @transform_14(%arg0: i32) -> (i32, i32, i32) {
    %c0_i32 = arith.constant 0 : i32
    %c0_i32_0 = arith.constant 0 : i32
    %c0_i32_1 = arith.constant 0 : i32
    return %arg0, %c0_i32, %c0_i32_0 : i32, i32, i32
  }
  func.func @transform_15(%arg0: i32) -> (i32, i32, i32) {
    %c0_i32 = arith.constant 0 : i32
    %c0_i32_0 = arith.constant 0 : i32
    %c0_i32_1 = arith.constant 0 : i32
    return %arg0, %c0_i32, %c0_i32_0 : i32, i32, i32
  }
  func.func @transform_16(%arg0: i32) -> (i32, i32, i32) {
    %c0_i32 = arith.constant 0 : i32
    %c0_i32_0 = arith.constant 0 : i32
    %c0_i32_1 = arith.constant 0 : i32
    return %arg0, %c0_i32, %c0_i32_0 : i32, i32, i32
  }
}

</mosaic_0001>

<bundles_post_ra>
// kernel: tpu_custom_call.1
= control target key start
LH: loop header
LB: loop body
LE: loop exit
PB: predicated region body
PF: predicated region fallthrough
CT: control target
= control target key end

     0   :  { %s4004_s0 = inlined_call_operand.vmem [shape: bf16[2,4,512], index: 0, kind: input, shape index: {}]   ;;  %s4005_s1 = inlined_call_operand.vmem [shape: bf16[8,36], index: 1, kind: input, shape index: {}]   ;;  %s4006_s2 = inlined_call_operand.vmem [shape: f32[8,1], index: 2, kind: input, shape index: {}]   ;;  %s4007_s3 = inlined_call_operand.vmem [shape: bf16[8,72], index: 3, kind: input, shape index: {}]   ;;  %s4008_s4 = inlined_call_operand.vmem [shape: f32[8,1], index: 4, kind: input, shape index: {}]   ;;  %s4009_s5 = inlined_call_operand.vmem [shape: bf16[8,4], index: 5, kind: input, shape index: {}]   ;;  %s4010_s6 = inlined_call_operand.vmem [shape: f32[8,1], index: 6, kind: input, shape index: {}]   ;;  %s4011_s7 = inlined_call_operand.vmem [shape: bf16[8,72], index: 7, kind: input, shape index: {}]   ;;  %s4012_s8 = inlined_call_operand.vmem [shape: f32[8,1], index: 8, kind: input, shape index: {}]   ;;  %s4013_s9 = inlined_call_operand.vmem [shape: bf16[8,72], index: 9, kind: input, shape index: {}]   ;;  %s4014_s10 = inlined_call_operand.vmem [shape: f32[8,1], index: 10, kind: input, shape index: {}]   ;;  %s4015_s11 = inlined_call_operand.vmem [shape: f32[1,384], index: 11, kind: input, shape index: {}]   ;;  %s4016_s12 = inlined_call_operand.vmem [shape: f32[1,384], index: 12, kind: input, shape index: {}]   ;;  %s4017_s13 = inlined_call_operand.hbm [shape: bf16[384,128], index: 13, kind: input, shape index: {}]   ;;  %s4018_s14 = inlined_call_operand.hbm [shape: f32[2,8,384], index: 14, kind: output, shape index: {0}]   ;;  %s4019_s15 = inlined_call_operand.hbm [shape: f32[2,8,384], index: 15, kind: output, shape index: {1}]   ;;  %s4020_s16 = inlined_call_operand.hbm [shape: f32[2,8,128], index: 16, kind: output, shape index: {2}]  }
   0x1   :  { %4039 = sst [smem:[#allocation20_spill]] %s4004_s0 }
   0x2   :  { %4040 = sst [smem:[#allocation21_spill]] %s4005_s1 }
   0x3   :  { %4041 = sst [smem:[#allocation22_spill]] %s4006_s2 }
   0x4   :  { %4042 = sst [smem:[#allocation23_spill]] %s4007_s3 }
   0x5   :  { %22 = vsyncpa [#allocation6], 0 }
   0x6   :  { %23 = vsyncpa [#allocation7], 0 }
   0x7   :  { %25 = vsyncpa [#allocation7 + $0x1], 0 }
   0x8   :  { %26 = vsyncpa [#allocation10], 0 }
   0x9   :  { %28 = vsyncpa [#allocation10 + $0x1], 0  ;;  %s3438_s21 = smov 0   ;;  %s3440_s22 = smov 0  }
   0xa   :  { %s3442_s23 = smov 0   ;;  %s3444_s24 = smov 0  }
   0xb LB: > { %4043 = sst [smem:[#allocation15_spill]] %s3320_s21  ;;  %s3459_s25 = sadd.s32 4294967295, %s3332_s24   ;;  %s3332_s24 = sphi %s3444_s24, %s4069_s24   ;;  %s3328_s23 = sphi %s3442_s23, %s4071_s23   ;;  %s3324_s22 = sphi %s3440_s22, %s4073_s22   ;;  %s3320_s21 = sphi %s3438_s21, %s4072_s21  }
   0xc   : > { %4044 = sst [smem:[#allocation16_spill]] %s3328_s23  ;;  %s4021_s26 = sadd.s32 4294967294, %s3332_s24  }
   0xd   : > { %s3463_s27 = sadd.s32 1, %s3332_s24   ;;  %s340_s28 = sadd.s32 1, %s3328_s23 }
   0xe   : > { %4045 = sst [smem:[#allocation17_spill]] %s3463_s27  ;;  %s337_s29 = ssub.s32 %s3332_s24, %s3463_s27 }
   0xf   : > { %p350_p0 = scmp.ne.s32.totalorder %s3328_s23, %s3324_s22  ;;  %p338_p1 = scmp.eq.s32.totalorder %s337_s29, 0 }
  0x10   : > { %p351_p2 = scmp.eq.s32.totalorder %s3459_s25, 1  ;;  %p356_p3 = scmp.ne.s32.totalorder %s3324_s22, %s3320_s21 }
  0x11   : > { %p357_p4 = scmp.eq.s32.totalorder %s4021_s26, 1  ;;  %p2752_p7 = scmp.ge.s32.totalorder %s3332_s24, 1 }
  0x12   : > { %s3476_s30 = scalar_select %p338_p1, %s3328_s23, %s340_s28  }
  0x13   : > { %p3478_p5 = por %p351_p2, %p350_p0  ;;  %p3482_p6 = por %p357_p4, %p356_p3 }
  0x14   : > { %4046 = sst [smem:[#allocation18_spill]] %s3476_s30  ;;  %p416_p8 = scmp.lt.s32.totalorder %s3332_s24, 3 }
  0x15   : > { %s4047_s0 = scalar_select %p3478_p5, 1, 0 }
  0x16   : > { %s4048_s17 = scalar_select %p3482_p6, 1, 0 }
  0x17   : > { %p4027_p9 = scmp.eq.s32.totalorder %s3459_s25, 0  ;;  %p3489_p10 = pnand %p2752_p7, %p416_p8 }
  0x18   : > { %4049 = sst [smem:[#allocation19_spill]] %s4048_s17  ;;  %s3334_s19 = smov [#allocation5]  }
  0x19   : > { %s4050_s18 = scalar_select %p3489_p10, 1, 0 }
  0x1a   : > { %s464_s20 = sshll.u32 %s3334_s19, 4  ;;  %p3034_p11 = pneg %p3489_p10  ;;  %s465_s20 = int_to_ptr.vmem [resolvable:$true] %s464_s20 }
  0x1b   : > { %s3178_s30 = scalar_lea.hbm %s4017_s13, 3072 }
  0x1c   : > { %p3497_p12 = pnand %p4027_p9, %p3034_p11  ;;  %p3179_p13 = scmp.ne.s32.totalorder %s4017_s13, %s3178_s30 }
  0x1d   : > { %p3185_p3 = scmp.lt.u32.totalorder %s3178_s30, %s4017_s13 }
  0x1e   : > { %p3180_p0 = pneg %p3497_p12 }
  0x20   : > { %p3181_p1 = pnand %p3180_p0, %p3179_p13 }
  0x22   : > { %p3182_p2 = pneg %p3181_p1 }
  0x24   : > { %p3187_p4 = pnand %p3185_p3, %p3182_p2 }
  0x26   : > { %3190 = shalt.err (!%p3187_p4)
}
  0x27   : > { %s3191_s21 = scalar_lea.vmem %s465_s20, 3072  ;;  %p3199_p9 = scmp.lt.s32.totalorder %s465_s20, %s465_s20 }
  0x28   : > { %p3192_p7 = scmp.ne.s32.totalorder %s465_s20, %s3191_s21  ;;  %p3200_p6 = scmp.lt.s32.totalorder %s3191_s21, %s3191_s21 }
  0x2a   : > { %p3194_p8 = pnand %p3192_p7, %p3180_p0  ;;  %p3201_p5 = por %p3200_p6, %p3199_p9 }
  0x2c   : > { %p3195_p11 = pneg %p3194_p8 }
  0x2e   : > { %p3202_p10 = pnand %p3201_p5, %p3195_p11 }
  0x30   : > { %3205 = shalt.err (!%p3202_p10)
}
  0x31   : > { %s3335_s23 = smov 64   ;;  %s3336_s26 = smov 4  }
  0x32   : > { %3037 = dma.hbm_to_vmem [thread:$0]  (!%p3497_p12), %s4017_s13, 3072, %s465_s20, [#allocation6], %s3335_s23, %s3335_s23, %s3336_s26  }
  0x33   : > { %p4052_p13 = scmp.ne.s32.totalorder %s4050_s18, 0 }
  0x34   : > { %p4053_p1 = scmp.eq.s32.totalorder (!%p4052_p13), %s3459_s25, 0 }
  0x35   : > { %488 = sbr.rel (%p4052_p13) target bundleno = 2026 (0x7ea), region = 76 }
  0x3c   : > { %3307 = dma.done.wait (%p4053_p1), [#allocation6], 3072   ;;  %p4054_p0 = pmov %p4053_p1 }
  0x3d   : > { %p548_p5 = scmp.lt.s32.totalorder %s3459_s25, 1  ;;  %v581_v0 = vlaneseq  ;;  %v3337_v1 = vmov 1983009808   ;;  %s4055_s20 = sld [smem:[#allocation20_spill]]  ;;  %v3342_v14 = vmov 0.0   ;;  %vm4034_vm0 = vmmov 0  }
  0x3e   : > { %3309 = vsyncadd (%p4054_p0), [#allocation6], 4294964224  ;;  %v579_v2 = vunpack.c.l.s4 %v3337_v1  ;;  %s4037_s19 = smov 126   ;;  %s3339_s23 = smov 127   ;;  %2929 = vmatprep.subr.bf16.mxu1 %v3342_v14  ;;  %2935 = vmatprep.mubr.msk.bf16.mxu1 %vm4034_vm0, %v3342_v14  ;;  %v3348_v15 = vmov 0   ;;  %vm600_vm1 = vcmask 1039360  }
  0x3f   : > { %s549_s21 = scalar_select %p548_p5, %s3459_s25, 1  ;;  %v3525_v3 = vshrl.u32 %v581_v0, 7  ;;  %927 = vmatprep.mubr.bf16.mxu0 %v3348_v15  ;;  %1029 = vst [vmem:[#allocation3 + $0xc] sm:$0xf] %v3348_v15  ;;  %1519 = vst [vmem:[#allocation4] sm:$0xff] %v3348_v15  ;;  %3099 = vset.pattern.permute.xlu0 %v3348_v15  ;;  %vm662_vm2 = vcmask 900096  }
  0x40   : > { %v580_v4 = vunpack.c.0.s8 %v579_v2  ;;  %s3340_s26 = smov 110   ;;  %s3341_s27 = smov 109   ;;  %1520 = vst [vmem:[#allocation4 + $0x8] sm:$0xff] %v3348_v15  ;;  %3100 = vset.pattern.permute.xlu1 %v3348_v15  ;;  %vm598_vm3 = vcmask 1043456   ;;  %vm631_vm4 = vcmask 1031168   ;;  %vm693_vm5 = vcmask 891904  }
  0x41   : > { %s2867_s30 = sshll.u32 %s549_s21, 3  ;;  %s3343_s29 = smov 108   ;;  %vm724_vm6 = vcmask 883712   ;;  %vm755_vm7 = vcmask 752640   ;;  %vm786_vm8 = vcmask 744448   ;;  %vm817_vm9 = vcmask 736256  }
  0x42   : > { %v583_v5 = vsub.s32 %v580_v4, %v3525_v3  ;;  %s4030_s21 = smov 92   ;;  %s4032_s17 = smov 90   ;;  %vm885_vm10 = vcmask 1041408   ;;  %vm881_vm11 = vcmask 293888   ;;  %vm1267_vm12 = vcmask 588800  }
  0x43   : > { %s552_s28 = scalar_lea.vmem %s4055_s20, %s2867_s30  ;;  %s3345_s30 = smov 91   ;;  %vm1399_vm13 = vcmask 31744   ;;  %vm1544_vm14 = vcmask 1043760   ;;  %vm1545_vm15 = vcmask 1047556  }
  0x44   : > { %v607_v6 = vld [vmem:[%s552_s28] sm:$0xff]  ;;  %s4056_s2 = sld [smem:[#allocation22_spill]]  ;;  %s4057_s1 = sld [smem:[#allocation21_spill]] }
  0x45   : > { %v554_v7 = vld [vmem:[%s552_s28] sm:$0x3f]  ;;  %v3531_v8 = vrot.slane %v607_v6, %v583_v5  ;;  %v609_v10 = vcombine.high %v607_v6, %v607_v6  ;;  %v577_v11 = vcombine.low %v607_v6, %v607_v6  ;;  %s4058_s3 = sld [smem:[#allocation23_spill]]  ;;  %s3349_s28 = smov 38  }
  0x46   : > { %v556_v9 = vcombine.high %v554_v7, %v554_v7  ;;  %2760 = vst.sshfl [vmem:[#allocation2] sm:$0xf pattern:$0x76325410] %v554_v7  ;;  %s4059_s18 = smov 92   ;;  %p4064_p9 = scmp.ne.s32.totalorder %s4047_s0, 0 }
  0x47   : > { %624 = vrot.lane.b32.xlu1 %v3531_v8, %s4037_s19  ;;  %594 = vrot.lane.b32.xlu0 %v3531_v8, %s3339_s23  ;;  %v3541_v12 = vrot.slane %v609_v10, %v583_v5  ;;  %v584_v13 = vrot.slane %v577_v11, %v583_v5 }
  0x48   : > { %2761 = vst.sshfl [vmem:[#allocation2 + $0x8] sm:$0x3 pattern:$0x76325410] %v556_v9 }
  0x4a   : > { %v835_v16 = vld [vmem:[%s4056_s2] sm:$0xff] }
  0x4b   : > { %657 = vrot.lane.b32.xlu1 %v3531_v8, %s3340_s26  ;;  %686 = vrot.lane.b32.xlu0 %v3531_v8, %s3341_s27 }
  0x4f   : > { %626 = vrot.lane.b32.xlu1 %v3541_v12, %s4037_s19  ;;  %592 = vrot.lane.b32.xlu0 %v584_v13, %s3339_s23 }
  0x53   : > { %688 = vrot.lane.b32.xlu1 %v3541_v12, %s3341_s27  ;;  %655 = vrot.lane.b32.xlu0 %v584_v13, %s3340_s26 }
  0x57   : > { %719 = vrot.lane.b32.xlu1 %v3531_v8, %s3343_s29  ;;  %717 = vrot.lane.b32.xlu0 %v584_v13, %s3343_s29 }
  0x5b   : > { %750 = vrot.lane.b32.xlu1 %v3541_v12, %s4030_s21  ;;  %748 = vrot.lane.b32.xlu0 %v3531_v8, %s4030_s21 }
  0x5f   : > { %781 = vrot.lane.b32.xlu1 %v3531_v8, %s3345_s30  ;;  %779 = vrot.lane.b32.xlu0 %v584_v13, %s3345_s30 }
  0x63   : > { %812 = vrot.lane.b32.xlu1 %v3541_v12, %s4032_s17  ;;  %810 = vrot.lane.b32.xlu0 %v3531_v8, %s4032_s17 }
  0x67   : > { %838 = vperm.xlu0 %3099, %v835_v16  }
  0xb9   : > { %v625_v17 = vpop.permute.xlu1 %624  ;;  %v595_v18 = vpop.permute.xlu0 %594 }
  0xba   : > { %v597_v19 = vrot.slane %v595_v18, 4  ;;  %v628_v27 = vrot.slane %v625_v17, 4 }
  0xbc   : > { %v602_v20 = vsel %vm600_vm1, %v595_v18, %v597_v19 }
  0xbd   : > { %606 = vst [vmem:[#allocation2 + $0x8] sm:$0xc] %v602_v20  ;;  %v658_v21 = vpop.permute.xlu1 %657  ;;  %v687_v22 = vpop.permute.xlu0 %686 }
  0xbe   : > { %v660_v23 = vrot.slane %v658_v21, 4  ;;  %v690_v30 = vrot.slane %v687_v22, 4 }
  0xc0   : > { %v664_v24 = vsel %vm662_vm2, %v658_v21, %v660_v23 }
  0xc1   : > { %668 = vst [vmem:[#allocation2 + $0x14] sm:$0xc] %v664_v24  ;;  %v627_v25 = vpop.permute.xlu1 %626  ;;  %v593_v26 = vpop.permute.xlu0 %592 }
  0xc2   : > { %v629_v28 = vrot.slane %v627_v25, 4  ;;  %v596_v29 = vrot.slane %v593_v26, 4 }
  0xc4   : > { %v630_v31 = vsel %vm598_vm3, %v628_v27, %v629_v28  ;;  %v633_v32 = vsel %vm631_vm4, %v627_v25, %v629_v28  ;;  %v599_v33 = vsel %vm598_vm3, %v596_v29, %v597_v19  ;;  %v824_v25 = vld [vmem:[%s4057_s1] sm:$0xf] }
  0xc5   : > { %v632_v34 = vsel %vm631_vm4, %v625_v17, %v630_v31  ;;  %637 = vst [vmem:[#allocation2 + $0x14] sm:$0x3] %v633_v32  ;;  %v601_v35 = vsel %vm600_vm1, %v593_v26, %v599_v33  ;;  %v689_v36 = vpop.permute.xlu1 %688  ;;  %v656_v37 = vpop.permute.xlu0 %655 }
  0xc6   : > { %636 = vst [vmem:[#allocation2 + $0xc] sm:$0x33] %v632_v34  ;;  %605 = vst [vmem:[#allocation2] sm:$0xcc] %v601_v35  ;;  %v691_v38 = vrot.slane %v689_v36, 4  ;;  %v659_v39 = vrot.slane %v656_v37, 4 }
  0xc8   : > { %v692_v40 = vsel %vm598_vm3, %v690_v30, %v691_v38  ;;  %v695_v41 = vsel %vm693_vm5, %v689_v36, %v691_v38  ;;  %v661_v42 = vsel %vm598_vm3, %v659_v39, %v660_v23 }
  0xc9   : > { %v694_v43 = vsel %vm693_vm5, %v687_v22, %v692_v40  ;;  %699 = vst [vmem:[#allocation2 + $0x20] sm:$0x3] %v695_v41  ;;  %v663_v44 = vsel %vm662_vm2, %v656_v37, %v661_v42  ;;  %v720_v45 = vpop.permute.xlu1 %719  ;;  %v718_v46 = vpop.permute.xlu0 %717 }
  0xca   : > { %698 = vst [vmem:[#allocation2 + $0x18] sm:$0x33] %v694_v43  ;;  %667 = vst [vmem:[#allocation2 + $0xc] sm:$0xcc] %v663_v44  ;;  %v722_v47 = vrot.slane %v720_v45, 4  ;;  %v721_v48 = vrot.slane %v718_v46, 4 }
  0xcc   : > { %v726_v49 = vsel %vm724_vm6, %v720_v45, %v722_v47  ;;  %v723_v50 = vsel %vm598_vm3, %v721_v48, %v722_v47  ;;  %v3104_v51 = vld [vmem:[#allocation2 + $0x8] ss:$12 sps:$4 sm:$0xff]  }
  0xcd   : > { %730 = vst [vmem:[#allocation2 + $0x20] sm:$0xc] %v726_v49  ;;  %v725_v52 = vsel %vm724_vm6, %v718_v46, %v723_v50  ;;  %v751_v53 = vpop.permute.xlu1 %750  ;;  %v749_v54 = vpop.permute.xlu0 %748  ;;  %2930 = vmatpush3.bf16.msra.mxu1 %v3104_v51  ;;  %v3612_v51 = vsub.s32 2, %v3525_v3 }
  0xce   : > { %729 = vst [vmem:[#allocation2 + $0x18] sm:$0xcc] %v725_v52  ;;  %v753_v55 = vrot.slane %v751_v53, 4  ;;  %v752_v56 = vrot.slane %v749_v54, 4  ;;  %2931 = vmatprep.subr.bf16.mxu1 %v3342_v14  ;;  %v994_v52 = vld [vmem:[%s4015_s11] sm:$0x7] }
  0xd0   : > { %v757_v57 = vsel %vm755_vm7, %v751_v53, %v753_v55  ;;  %v754_v58 = vsel %vm598_vm3, %v752_v56, %v753_v55  ;;  %v3618_v53 = vsub.s32 0, %v3525_v3  ;;  %v1007_v55 = vrot.slane %v994_v52, %v3612_v51 }
  0xd1   : > { %761 = vst [vmem:[#allocation2 + $0x2c] sm:$0x3] %v757_v57  ;;  %v756_v59 = vsel %vm755_vm7, %v749_v54, %v754_v58  ;;  %v782_v60 = vpop.permute.xlu1 %781  ;;  %v780_v61 = vpop.permute.xlu0 %779  ;;  %v3105_v62 = vld [vmem:[#allocation2 + $0x4] ss:$12 sps:$4 sm:$0xff]   ;;  %v3107_v63 = vld [vmem:[#allocation2] ss:$12 sps:$4 sm:$0xff]  }
  0xd2   : > { %760 = vst [vmem:[#allocation2 + $0x24] sm:$0x33] %v756_v59  ;;  %v784_v0 = vrot.slane %v782_v60, 4  ;;  %v783_v1 = vrot.slane %v780_v61, 4  ;;  %895 = vmatprep.subr.bf16.mxu0 %v3105_v62  ;;  %v3621_v54 = vsub.s32 1, %v3525_v3  ;;  %v999_v58 = vrot.slane %v994_v52, %v3618_v53 }
  0xd3   : > { %896 = vmatpush1.bf16.msra.mxu0 %v3107_v63 }
  0xd4   : > { %v788_v2 = vsel %vm786_vm8, %v782_v60, %v784_v0  ;;  %v785_v4 = vsel %vm598_vm3, %v783_v1, %v784_v0  ;;  %v1003_v60 = vrot.slane %v994_v52, %v3621_v54 }
  0xd5   : > { %792 = vst [vmem:[#allocation2 + $0x2c] sm:$0xc] %v788_v2  ;;  %v787_v5 = vsel %vm786_vm8, %v780_v61, %v785_v4  ;;  %v813_v6 = vpop.permute.xlu1 %812  ;;  %v811_v7 = vpop.permute.xlu0 %810 }
  0xd6   : > { %791 = vst [vmem:[#allocation2 + $0x24] sm:$0xcc] %v787_v5  ;;  %v815_v9 = vrot.slane %v813_v6, 4  ;;  %v814_v10 = vrot.slane %v811_v7, 4 }
  0xd8   : > { %v819_v11 = vsel %vm817_vm9, %v813_v6, %v815_v9  ;;  %v816_v13 = vsel %vm598_vm3, %v814_v10, %v815_v9  ;;  %v1386_v9 = vcombine.high %v3531_v8, %v3531_v8  ;;  %v1387_v10 = vcombine.high %v3541_v12, %v3541_v12 }
  0xd9   : > { %823 = vst [vmem:[#allocation2 + $0x38] sm:$0x3] %v819_v11  ;;  %v818_v16 = vsel %vm817_vm9, %v811_v7, %v816_v13  ;;  %v1189_v7 = vld [vmem:[%s4008_s4] sm:$0xff] }
  0xda   : > { %822 = vst [vmem:[#allocation2 + $0x30] sm:$0x33] %v818_v16  ;;  %v1364_v11 = vld [vmem:[%s4010_s6] sm:$0xff] }
  0xdc   : > { %v3108_v17 = vld [vmem:[#allocation2 + $0x20] ss:$12 sps:$4 sm:$0xff]  }
  0xdd   : > { %v3109_v18 = vld [vmem:[#allocation2 + $0x1c] ss:$12 sps:$4 sm:$0xff]   ;;  %v3111_v19 = vld [vmem:[#allocation2 + $0x18] ss:$12 sps:$4 sm:$0xff]   ;;  %2932 = vmatpush3.bf16.msra.mxu1 %v3108_v17 }
  0xde   : > { %897 = vmatprep.subr.bf16.mxu0 %v3109_v18  ;;  %2933 = vmatprep.subr.bf16.mxu1 %v3342_v14 }
  0xdf   : > { %898 = vmatpush1.bf16.msra.mxu0 %v3111_v19 }
  0xe0   : > { %v3113_v20 = vld [vmem:[#allocation2 + $0x38] ss:$0 sps:$4 sm:$0x33]  }
  0xe1   : > { %v833_v21 = vld [vmem:[#allocation2 + $0x30] sm:$0x33]  ;;  %v893_v23 = vsel %vm885_vm10, %v3113_v20, 0 }
  0xe2   : > { %v2769_v22 = vcombine.high %v833_v21, %v833_v21  ;;  %v2768_v24 = vcombine.low %v833_v21, %v833_v21  ;;  %2934 = vmatpush3.bf16.msra.mxu1 %v893_v23 }
  0xe3   : > { %2939 = vmatprep.subr.bf16.mxu1 %v3342_v14 }
  0xe4   : > { %2771 = vmatprep.subr.msk.bf16.mxu0 %vm885_vm10, %v2769_v22  ;;  %v887_v26 = vsel %vm885_vm10, %v2768_v24, 0 }
  0xe5   : > { %900 = vmatpush1.bf16.msra.mxu0 %v887_v26  ;;  %2936 = vmatmul.mubr.msk.bf16.vlgmr.msra.gmra.mrb[0].mxu1 %vm881_vm11, %v824_v25 }
  0xe6   : > { %2949 = vmatprep.mubr.msk.bf16.mxu1 %vm4034_vm0, %v3342_v14  ;;  %v839_v27 = vpop.permute.xlu0 %838 }
  0xe8   : > { %2772 = vmatmul.mubr.msk.bf16.vlgmr.msra.gmra.mrb[0].mxu0 %vm881_vm11, %v824_v25  ;;  %vm1546_vm11 = vmor %vm1545_vm15, %vm1544_vm14 }
  0xe9   : > { %1313 = vmatprep.mubr.bf16.mxu0 %v3348_v15 }
 0x1b8   : > { %v970_v28 = vpop.f32.mrb[0].mxu1 }
 0x1b9   : > { %v971_v29 = vadd.f32 %v970_v28, %v839_v27  ;;  %v2937_v30 = vpop.f32.mrb[1].mxu1 }
 0x1ba   : > { %v973_v32 = vpop.f32.mrb[2].mxu1 }
 0x1bb   : > { %v929_v31 = vpop.f32.mrb[0].mxu0  ;;  %v978_v33 = vsub.f32 0.0, %v971_v29  ;;  %v2938_v36 = vpop.f32.mrb[3].mxu1 }
 0x1bc   : > { %v930_v34 = vadd.f32 %v929_v31, %v839_v27  ;;  %v931_v35 = vpop.f32.mrb[1].mxu0 }
 0x1bd   : > { %v932_v37 = vadd.f32 %v931_v35, %v839_v27  ;;  %v933_v38 = vpop.f32.mrb[2].mxu0  ;;  %v983_v39 = vmul.f32 1.442695, %v978_v33 }
 0x1be   : > { %v976_v40 = vsub.f32 0.0, %v930_v34  ;;  %v934_v41 = vpop.f32.mrb[3].mxu0 }
 0x1bf   : > { %v977_v42 = vsub.f32 0.0, %v932_v37  ;;  %3154 = vpow2.f32 %v983_v39 }
 0x1c0   : > { %v979_v43 = vmul.f32 1.442695, %v976_v40 }
 0x1c1   : > { %v981_v44 = vmul.f32 1.442695, %v977_v42 }
 0x1c2   : > { %3156 = vpow2.f32 %v979_v43 }
 0x1c3   : > { %3158 = vpow2.f32 %v981_v44 }
 0x1c9   : > { %v3155_v45 = vpop.eup %3154 }
 0x1ca   : > { %v987_v46 = vadd.f32 1.0, %v3155_v45 }
 0x1cc   : > { %v3157_v47 = vpop.eup %3156  ;;  %3160 = vrcp.f32 %v987_v46 }
 0x1cd   : > { %v3159_v48 = vpop.eup %3158  ;;  %v985_v49 = vadd.f32 1.0, %v3157_v47 }
 0x1ce   : > { %v986_v50 = vadd.f32 1.0, %v3159_v48 }
 0x1cf   : > { %3162 = vrcp.f32 %v985_v49 }
 0x1d0   : > { %3164 = vrcp.f32 %v986_v50 }
 0x1d6   : > { %v3161_v56 = vpop.eup %3160 }
 0x1d7   : > { %v993_v57 = vmul.f32 %v3161_v56, %v971_v29 }
 0x1d9   : > { %v3163_v59 = vpop.eup %3162  ;;  %v1013_v62 = vmul.f32 %v1007_v55, %v993_v57 }
 0x1da   : > { %v3165_v61 = vpop.eup %3164  ;;  %v991_v63 = vmul.f32 %v3163_v59, %v930_v34 }
 0x1db   : > { %v992_v0 = vmul.f32 %v3165_v61, %v932_v37  ;;  %v2869_v1 = vpack.c.bf16 %v1013_v62, %v1013_v62 }
 0x1dc   : > { %v1011_v2 = vmul.f32 %v999_v58, %v991_v63 }
 0x1dd   : > { %v1012_v4 = vmul.f32 %v1003_v60, %v992_v0  ;;  %1028 = vst [vmem:[#allocation3 + $0x8] sm:$0xf] %v2869_v1 }
 0x1df   : > { %v3626_v5 = vpack.c.bf16 %v1012_v4, %v1011_v2 }
 0x1e1   : > { %1055 = vrot.lane.b32.xlu0 %v3626_v5, %s4037_s19 }
 0x1e4   : > { %v1031_v3 = vld [vmem:[#allocation3 + $0x8] sm:$0xf] }
 0x1e5   : > { %v1035_v6 = vld [vmem:[#allocation3 + $0x8] sm:$0xff]  ;;  %1072 = vrot.lane.b32.xlu0 %v3626_v5, %s3340_s26  ;;  %1033 = vst [vmem:[#allocation2 + $0x8] sm:$0xf] %v1031_v3 }
 0x1e6   : > { %1040 = vrot.lane.b32.xlu1 %v1035_v6, %s3339_s23  ;;  %1934 = vst [vmem:[#allocation3 + $0xc] sm:$0xf] %v3348_v15 }
 0x1e9   : > { %1089 = vrot.lane.b32.xlu0 %v3626_v5, %s3341_s27 }
 0x1ea   : > { %1057 = vrot.lane.b32.xlu1 %v1035_v6, %s4037_s19 }
 0x1ed   : > { %1106 = vrot.lane.b32.xlu0 %v3626_v5, %s3343_s29 }
 0x1ee   : > { %1074 = vrot.lane.b32.xlu1 %v1035_v6, %s3340_s26 }
 0x1f1   : > { %1123 = vrot.lane.b32.xlu0 %v3626_v5, %s4030_s21 }
 0x1f2   : > { %1091 = vrot.lane.b32.xlu1 %v1035_v6, %s3341_s27 }
 0x1f5   : > { %1140 = vrot.lane.b32.xlu0 %v3626_v5, %s3345_s30 }
 0x1f6   : > { %1038 = vrot.lane.b32.xlu1 %v3626_v5, %s3339_s23 }
 0x1f9   : > { %1157 = vrot.lane.b32.xlu0 %v3626_v5, %s4032_s17 }
 0x1fa   : > { %1108 = vrot.lane.b32.xlu1 %v1035_v6, %s3343_s29 }
 0x1fd   : > { %1388 = vrot.lane.b32.xlu0 %v3531_v8, %s4032_s17 }
 0x1fe   : > { %1125 = vrot.lane.b32.xlu1 %v1035_v6, %s4030_s21  ;;  %s3725_s21 = sand.u32 1, %s3324_s22  }
 0x1ff   : > { %s4036_s20 = smul.u32 24, %s3725_s21 }
 0x201   : > { %1392 = vrot.lane.b32.xlu0 %v3541_v12, %s4032_s17 }
 0x202   : > { %1142 = vrot.lane.b32.xlu1 %v1035_v6, %s3345_s30 }
 0x205   : > { %1192 = vperm.xlu0 %3099, %v1189_v7  }
 0x206   : > { %1159 = vrot.lane.b32.xlu1 %v1035_v6, %s4032_s17 }
 0x20a   : > { %1390 = vrot.lane.b32.xlu1 %v1386_v9, %s4032_s17 }
 0x20e   : > { %1394 = vrot.lane.b32.xlu1 %v1387_v10, %s4032_s17  ;;  %s3740_s17 = scalar_lea.vmem [#allocation8], %s4036_s20 }
 0x212   : > { %1367 = vperm.xlu1 %3100, %v1364_v11  }
 0x253   : > { %v1056_v13 = vpop.permute.xlu0 %1055 }
 0x254   : > { %v1059_v33 = vrot.slane %v1056_v13, 4 }
 0x257   : > { %v1073_v16 = vpop.permute.xlu0 %1072 }
 0x258   : > { %v1041_v17 = vpop.permute.xlu1 %1040  ;;  %v1076_v29 = vrot.slane %v1073_v16, 4 }
 0x259   : > { %v1043_v18 = vrot.slane %v1041_v17, 4 }
 0x25b   : > { %v1046_v19 = vsel %vm600_vm1, %v1041_v17, %v1043_v18  ;;  %v1090_v20 = vpop.permute.xlu0 %1089 }
 0x25c   : > { %1050 = vst [vmem:[#allocation2 + $0x14] sm:$0xf] %v1046_v19  ;;  %v1058_v8 = vpop.permute.xlu1 %1057  ;;  %v1093_v40 = vrot.slane %v1090_v20, 4 }
 0x25d   : > { %v1060_v21 = vrot.slane %v1058_v8, 4 }
 0x25f   : > { %v1063_v22 = vsel %vm631_vm4, %v1058_v8, %v1060_v21  ;;  %v1107_v24 = vpop.permute.xlu0 %1106  ;;  %v1061_v36 = vsel %vm598_vm3, %v1059_v33, %v1060_v21 }
 0x260   : > { %1067 = vst [vmem:[#allocation2 + $0x20] sm:$0xf] %v1063_v22  ;;  %v1075_v12 = vpop.permute.xlu1 %1074  ;;  %v1110_v43 = vrot.slane %v1107_v24, 4  ;;  %v1062_v48 = vsel %vm631_vm4, %v1056_v13, %v1061_v36 }
 0x261   : > { %v1077_v23 = vrot.slane %v1075_v12, 4 }
 0x263   : > { %v1080_v25 = vsel %vm662_vm2, %v1075_v12, %v1077_v23  ;;  %v3115_v26 = vld [vmem:[#allocation2 + $0x8] ss:$12 sps:$4 sm:$0xff]   ;;  %v1124_v31 = vpop.permute.xlu0 %1123  ;;  %v1078_v34 = vsel %vm598_vm3, %v1076_v29, %v1077_v23 }
 0x264   : > { %1084 = vst [vmem:[#allocation2 + $0x2c] sm:$0xf] %v1080_v25  ;;  %v1092_v27 = vpop.permute.xlu1 %1091  ;;  %2940 = vmatpush3.bf16.msra.mxu1 %v3115_v26  ;;  %v1079_v39 = vsel %vm662_vm2, %v1073_v16, %v1078_v34  ;;  %v1127_v61 = vrot.slane %v1124_v31, 4 }
 0x265   : > { %v1094_v28 = vrot.slane %v1092_v27, 4  ;;  %2941 = vmatprep.subr.bf16.mxu1 %v3342_v14  ;;  %v2780_v55 = vcombine.high %v1062_v48, %v1079_v39  ;;  %v2779_v60 = vcombine.low %v1062_v48, %v1079_v39  ;;  %v1496_v39 = vld [vmem:[%s4016_s12] sm:$0x7] }
 0x267   : > { %v1097_v30 = vsel %vm693_vm5, %v1092_v27, %v1094_v28  ;;  %v1141_v45 = vpop.permute.xlu0 %1140  ;;  %v1095_v49 = vsel %vm598_vm3, %v1093_v40, %v1094_v28 }
 0x268   : > { %1101 = vst [vmem:[#allocation2 + $0x38] sm:$0xf] %v1097_v30  ;;  %v1039_v32 = vpop.permute.xlu1 %1038  ;;  %v1096_v59 = vsel %vm693_vm5, %v1090_v20, %v1095_v49  ;;  %v1144_v2 = vrot.slane %v1141_v45, 4  ;;  %v1170_v30 = vld [vmem:[%s4058_s3] sm:$0xf] }
 0x269   : > { %v1042_v35 = vrot.slane %v1039_v32, 4 }
 0x26b   : > { %v1044_v37 = vsel %vm598_vm3, %v1042_v35, %v1043_v18  ;;  %v3116_v38 = vld [vmem:[#allocation2 + $0x20] ss:$12 sps:$4 sm:$0xff]   ;;  %v1158_v63 = vpop.permute.xlu0 %1157 }
 0x26c   : > { %v1045_v41 = vsel %vm600_vm1, %v1039_v32, %v1044_v37  ;;  %v1109_v42 = vpop.permute.xlu1 %1108  ;;  %2942 = vmatpush3.bf16.msra.mxu1 %v3116_v38  ;;  %v1161_v17 = vrot.slane %v1158_v63, 4  ;;  %v1363_v37 = vld [vmem:[%s4009_s5] sm:$0xf] }
 0x26d   : > { %v1111_v44 = vrot.slane %v1109_v42, 4  ;;  %v2777_v46 = vcombine.high %v3626_v5, %v1045_v41  ;;  %v2776_v47 = vcombine.low %v3626_v5, %v1045_v41  ;;  %2943 = vmatprep.subr.bf16.mxu1 %v3342_v14 }
 0x26f   : > { %v1112_v50 = vsel %vm598_vm3, %v1110_v43, %v1111_v44  ;;  %v1114_v52 = vsel %vm724_vm6, %v1109_v42, %v1111_v44  ;;  %1281 = vmatprep.subr.bf16.mxu0 %v2777_v46  ;;  %v1389_v10 = vpop.permute.xlu0 %1388  ;;  %v1501_v42 = vrot.slane %v1496_v39, %v3618_v53  ;;  %v1505_v44 = vrot.slane %v1496_v39, %v3621_v54 }
 0x270   : > { %v1113_v56 = vsel %vm724_vm6, %v1107_v24, %v1112_v50  ;;  %1118 = vst [vmem:[#allocation2 + $0x44] sm:$0xf] %v1114_v52  ;;  %v1126_v57 = vpop.permute.xlu1 %1125  ;;  %1282 = vmatpush1.bf16.msra.mxu0 %v2776_v47 }
 0x271   : > { %v1128_v58 = vrot.slane %v1126_v57, 4  ;;  %1283 = vmatprep.subr.bf16.mxu0 %v2780_v55  ;;  %v2783_v0 = vcombine.high %v1096_v59, %v1113_v56  ;;  %v2782_v3 = vcombine.low %v1096_v59, %v1113_v56  ;;  %v1509_v55 = vrot.slane %v1496_v39, %v3612_v51 }
 0x273   : > { %v1131_v62 = vsel %vm755_vm7, %v1126_v57, %v1128_v58  ;;  %v1129_v4 = vsel %vm598_vm3, %v1127_v61, %v1128_v58  ;;  %v1393_v23 = vpop.permute.xlu0 %1392 }
 0x274   : > { %1135 = vst [vmem:[#allocation2 + $0x50] sm:$0xf] %v1131_v62  ;;  %v1143_v1 = vpop.permute.xlu1 %1142  ;;  %1284 = vmatpush1.bf16.msra.mxu0 %v2779_v60  ;;  %v1130_v11 = vsel %vm755_vm7, %v1124_v31, %v1129_v4 }
 0x275   : > { %v1145_v5 = vrot.slane %v1143_v1, 4  ;;  %1285 = vmatprep.subr.bf16.mxu0 %v2783_v0 }
 0x277   : > { %v1146_v6 = vsel %vm598_vm3, %v1144_v2, %v1145_v5  ;;  %v1148_v7 = vsel %vm786_vm8, %v1143_v1, %v1145_v5  ;;  %v3117_v9 = vld [vmem:[#allocation2 + $0x38] ss:$12 sps:$4 sm:$0xff]  }
 0x278   : > { %v1147_v13 = vsel %vm786_vm8, %v1141_v45, %v1146_v6  ;;  %1152 = vst [vmem:[#allocation2 + $0x5c] sm:$0xf] %v1148_v7  ;;  %v1160_v16 = vpop.permute.xlu1 %1159  ;;  %1286 = vmatpush1.bf16.msra.mxu0 %v2782_v3  ;;  %2944 = vmatpush3.bf16.msra.mxu1 %v3117_v9 }
 0x279   : > { %v1162_v18 = vrot.slane %v1160_v16, 4  ;;  %v2786_v19 = vcombine.high %v1130_v11, %v1147_v13  ;;  %v2785_v20 = vcombine.low %v1130_v11, %v1147_v13  ;;  %2945 = vmatprep.subr.bf16.mxu1 %v3342_v14  ;;  %v1710_v11 = vld [vmem:[%s4012_s8] sm:$0xff] }
 0x27b   : > { %v1163_v8 = vsel %vm598_vm3, %v1161_v17, %v1162_v18  ;;  %v1165_v21 = vsel %vm817_vm9, %v1160_v16, %v1162_v18  ;;  %1287 = vmatprep.subr.bf16.mxu0 %v2786_v19 }
 0x27c   : > { %v1164_v22 = vsel %vm817_vm9, %v1158_v63, %v1163_v8  ;;  %1169 = vst [vmem:[#allocation2 + $0x68] sm:$0xf] %v1165_v21  ;;  %1288 = vmatpush1.bf16.msra.mxu0 %v2785_v20  ;;  %v1391_v12 = vpop.permute.xlu1 %1390 }
 0x27d   : > { %v2789_v24 = vcombine.high %v1164_v22, %v1164_v22  ;;  %v2788_v25 = vcombine.low %v1164_v22, %v1164_v22  ;;  %v1396_v26 = vsel %vm817_vm9, %v1389_v10, %v1391_v12  ;;  %v1397_v27 = vsel %vm817_vm9, %v1391_v12, %v1393_v23 }
 0x27e   : > { %v1404_v31 = vsel %vm885_vm10, %v1396_v26, 0 }
 0x27f   : > { %v3118_v28 = vld [vmem:[#allocation2 + $0x50] ss:$12 sps:$4 sm:$0xff]   ;;  %2791 = vmatprep.subr.msk.bf16.mxu0 %vm598_vm3, %v2789_v24  ;;  %v1273_v29 = vsel %vm598_vm3, %v2788_v25, 0 }
 0x280   : > { %1290 = vmatpush1.bf16.msra.mxu0 %v1273_v29  ;;  %2946 = vmatpush3.bf16.msra.mxu1 %v3118_v28  ;;  %v1395_v32 = vpop.permute.xlu1 %1394 }
 0x281   : > { %2794 = vmatprep.subr.msk.bf16.mxu0 %vm885_vm10, %v1397_v27  ;;  %2947 = vmatprep.subr.bf16.mxu1 %v3342_v14  ;;  %v1398_v34 = vsel %vm817_vm9, %v1393_v23, %v1395_v32 }
 0x282   : > { %v1410_v36 = vsel %vm885_vm10, %v1398_v34, 0  ;;  %vm1538_vm10 = vcmask 310272  }
 0x283   : > { %v3119_v33 = vld [vmem:[#allocation2 + $0x68] ss:$0 sps:$4 sm:$0xff]   ;;  %2792 = vmatmul.mubr.msk.bf16.vlgmr.msra.gmra.mrb[4].mxu0 %vm1267_vm12, %v1170_v30 }
 0x284   : > { %1413 = vmatpush1.bf16.msra.mxu0 %v1404_v31  ;;  %1444 = vmatprep.mubr.bf16.mxu0 %v3348_v15  ;;  %v1279_v35 = vsel %vm598_vm3, %v3119_v33, 0  ;;  %v1193_v40 = vpop.permute.xlu0 %1192 }
 0x285   : > { %2948 = vmatpush3.bf16.msra.mxu1 %v1279_v35 }
 0x286   : > { %2953 = vmatprep.subr.bf16.mxu1 %v3342_v14 }
 0x288   : > { %2950 = vmatmul.mubr.msk.bf16.vlgmr.msra.gmra.mrb[4].mxu1 %vm1267_vm12, %v1170_v30 }
 0x289   : > { %2954 = vmatpush3.bf16.msra.mxu1 %v1410_v36  ;;  %2955 = vmatprep.mubr.msk.bf16.mxu1 %vm4034_vm0, %v3342_v14 }
 0x28a   : > { %2959 = vmatprep.subr.bf16.mxu1 %v3342_v14 }
 0x28f   : > { %2795 = vmatmul.mubr.msk.bf16.vlgmr.msra.gmra.mrb[4].mxu0 %vm1399_vm13, %v1363_v37 }
 0x290   : > { %1832 = vmatprep.mubr.bf16.mxu0 %v3348_v15 }
 0x291   : > { %v1368_v38 = vpop.permute.xlu1 %1367 }
 0x292   : > { %v3007_v41 = vadd.f32 %v1368_v38, %v1193_v40 }
 0x294   : > { %2956 = vmatmul.mubr.msk.bf16.vlgmr.msra.gmra.mrb[4].mxu1 %vm1399_vm13, %v1363_v37  ;;  %vm1548_vm13 = vcmask 310276  }
 0x295   : > { %2969 = vmatprep.mubr.msk.bf16.mxu1 %vm4034_vm0, %v3342_v14  ;;  %vm1549_vm0 = vmor %vm1548_vm13, %vm598_vm3 }
 0x362   : > { %v1446_v43 = vpop.f32.mrb[4].mxu0 }
 0x363   : > { %v3008_v45 = vadd.f32 %v3007_v41, %v1446_v43  ;;  %v1448_v46 = vpop.f32.mrb[5].mxu0 }
 0x364   : > { %v3010_v47 = vadd.f32 %v3007_v41, %v1448_v46  ;;  %v1450_v48 = vpop.f32.mrb[6].mxu0 }
 0x365   : > { %v3733_v49 = vmul.f32 %v3008_v45, %v1501_v42  ;;  %v1451_v50 = vpop.f32.mrb[7].mxu0 }
 0x366   : > { %v3735_v52 = vmul.f32 %v3010_v47, %v1505_v44 }
 0x367   : > { %1516 = vst [vmem:[%s3740_s17] sm:$0xff] %v3733_v49  ;;  %v1487_v56 = vpop.f32.mrb[4].mxu1 }
 0x368   : > { %1517 = vst [vmem:[%s3740_s17 + $0x8] sm:$0xff] %v3735_v52  ;;  %v2870_v57 = vpack.c.bf16 %v3735_v52, %v3733_v49  ;;  %v3012_v58 = vadd.f32 %v3007_v41, %v1487_v56  ;;  %v2957_v59 = vpop.f32.mrb[5].mxu1 }
 0x369   : > { %v1490_v60 = vpop.f32.mrb[6].mxu1 }
 0x36a   : > { %1532 = vrot.lane.b32.xlu0 %v2870_v57, %s3349_s28  ;;  %v3748_v61 = vmul.f32 %v3012_v58, %v1509_v55  ;;  %v2958_v62 = vpop.f32.mrb[7].mxu1 }
 0x36c   : > { %1518 = vst [vmem:[%s3740_s17 + $0x10] sm:$0xff] %v3748_v61  ;;  %v2871_v63 = vpack.c.bf16 %v3748_v61, %v3748_v61 }
 0x36e   : > { %1534 = vrot.lane.b32.xlu1 %v2871_v63, %s3349_s28  ;;  %s4060_s28 = smov 90  }
 0x3dc   : > { %v1533_v0 = vpop.permute.xlu0 %1532 }
 0x3dd   : > { %v1536_v1 = vrot.slane %v1533_v0, 4 }
 0x3df   : > { %v1539_v2 = vsel %vm1538_vm10, %v1536_v1, %v1533_v0 }
 0x3e0   : > { %1547 = vst.msk [vmem:[#allocation4] sm:$0xff] %vm1546_vm11, %v1539_v2  ;;  %v1535_v4 = vpop.permute.xlu1 %1534 }
 0x3e1   : > { %v1537_v5 = vrot.slane %v1535_v4, 4 }
 0x3e3   : > { %v1540_v3 = vsel %vm598_vm3, %v1536_v1, %v1537_v5 }
 0x3e4   : > { %v1541_v6 = vsel %vm1538_vm10, %v1540_v3, %v1535_v4 }
 0x3e5   : > { %1550 = vst.msk [vmem:[#allocation4 + $0x8] sm:$0xff] %vm1549_vm0, %v1541_v6  ;;  %vm4061_vm0 = vmmov 0  }
 0x3e7   : > { %v1551_v7 = vld [vmem:[#allocation4] sm:$0xff] }
 0x3e8   : > { %1559 = vrot.lane.b32.xlu0 %v1551_v7, %s3339_s23 }
 0x3ec   : > { %1576 = vrot.lane.b32.xlu0 %v1551_v7, %s4037_s19  ;;  %v1552_v9 = vld [vmem:[#allocation4 + $0x8] sm:$0xf] }
 0x3ed   : > { %v1556_v10 = vld [vmem:[#allocation4 + $0x8] sm:$0xff]  ;;  %1554 = vst [vmem:[#allocation2 + $0x8] sm:$0xf] %v1552_v9 }
 0x3ee   : > { %1561 = vrot.lane.b32.xlu1 %v1556_v10, %s3339_s23 }
 0x3f0   : > { %1593 = vrot.lane.b32.xlu0 %v1551_v7, %s3340_s26 }
 0x3f2   : > { %1578 = vrot.lane.b32.xlu1 %v1556_v10, %s4037_s19  ;;  %s4062_s19 = smov 126  }
 0x3f4   : > { %1610 = vrot.lane.b32.xlu0 %v1551_v7, %s3341_s27 }
 0x3f6   : > { %1595 = vrot.lane.b32.xlu1 %v1556_v10, %s3340_s26 }
 0x3f8   : > { %1627 = vrot.lane.b32.xlu0 %v1551_v7, %s3343_s29 }
 0x3fa   : > { %1612 = vrot.lane.b32.xlu1 %v1556_v10, %s3341_s27 }
 0x3fc   : > { %1644 = vrot.lane.b32.xlu0 %v1551_v7, %s4059_s18 }
 0x3fe   : > { %1629 = vrot.lane.b32.xlu1 %v1556_v10, %s3343_s29 }
 0x400   : > { %1661 = vrot.lane.b32.xlu0 %v1551_v7, %s3345_s30 }
 0x402   : > { %1646 = vrot.lane.b32.xlu1 %v1556_v10, %s4059_s18 }
 0x404   : > { %1678 = vrot.lane.b32.xlu0 %v1551_v7, %s4060_s28 }
 0x406   : > { %1663 = vrot.lane.b32.xlu1 %v1556_v10, %s3345_s30 }
 0x408   : > { %1713 = vperm.xlu0 %3099, %v1710_v11  }
 0x40a   : > { %1680 = vrot.lane.b32.xlu1 %v1556_v10, %s4060_s28 }
 0x45a   : > { %v1560_v13 = vpop.permute.xlu0 %1559 }
 0x45b   : > { %v1563_v18 = vrot.slane %v1560_v13, 4 }
 0x45e   : > { %v1577_v16 = vpop.permute.xlu0 %1576 }
 0x45f   : > { %v1580_v27 = vrot.slane %v1577_v16, 4 }
 0x460   : > { %v1562_v17 = vpop.permute.xlu1 %1561 }
 0x461   : > { %v1564_v19 = vrot.slane %v1562_v17, 4 }
 0x462   : > { %v1594_v20 = vpop.permute.xlu0 %1593 }
 0x463   : > { %v1565_v8 = vsel %vm598_vm3, %v1563_v18, %v1564_v19  ;;  %v1567_v21 = vsel %vm600_vm1, %v1562_v17, %v1564_v19  ;;  %v1597_v31 = vrot.slane %v1594_v20, 4 }
 0x464   : > { %v1566_v22 = vsel %vm600_vm1, %v1560_v13, %v1565_v8  ;;  %1571 = vst [vmem:[#allocation2 + $0x14] sm:$0xf] %v1567_v21  ;;  %v1579_v12 = vpop.permute.xlu1 %1578 }
 0x465   : > { %v1581_v23 = vrot.slane %v1579_v12, 4  ;;  %v2800_v24 = vcombine.high %v1551_v7, %v1566_v22  ;;  %v2799_v25 = vcombine.low %v1551_v7, %v1566_v22 }
 0x466   : > { %v1611_v26 = vpop.permute.xlu0 %1610 }
 0x467   : > { %v1584_v28 = vsel %vm631_vm4, %v1579_v12, %v1581_v23  ;;  %1800 = vmatprep.subr.bf16.mxu0 %v2800_v24  ;;  %v1582_v30 = vsel %vm598_vm3, %v1580_v27, %v1581_v23  ;;  %v1614_v44 = vrot.slane %v1611_v26, 4 }
 0x468   : > { %1588 = vst [vmem:[#allocation2 + $0x20] sm:$0xf] %v1584_v28  ;;  %v1596_v29 = vpop.permute.xlu1 %1595  ;;  %1801 = vmatpush1.bf16.msra.mxu0 %v2799_v25  ;;  %v1583_v37 = vsel %vm631_vm4, %v1577_v16, %v1582_v30  ;;  %v1691_v28 = vld [vmem:[%s4011_s7] sm:$0xf] }
 0x469   : > { %v1598_v32 = vrot.slane %v1596_v29, 4 }
 0x46a   : > { %v1628_v33 = vpop.permute.xlu0 %1627 }
 0x46b   : > { %v1599_v34 = vsel %vm598_vm3, %v1597_v31, %v1598_v32  ;;  %v1601_v35 = vsel %vm662_vm2, %v1596_v29, %v1598_v32  ;;  %v3120_v36 = vld [vmem:[#allocation2 + $0x8] ss:$12 sps:$4 sm:$0xff]   ;;  %v1631_v48 = vrot.slane %v1628_v33, 4 }
 0x46c   : > { %v1600_v38 = vsel %vm662_vm2, %v1594_v20, %v1599_v34  ;;  %1605 = vst [vmem:[#allocation2 + $0x2c] sm:$0xf] %v1601_v35  ;;  %v1613_v39 = vpop.permute.xlu1 %1612  ;;  %2960 = vmatpush3.bf16.msra.mxu1 %v3120_v36 }
 0x46d   : > { %v1615_v40 = vrot.slane %v1613_v39, 4  ;;  %v2803_v41 = vcombine.high %v1583_v37, %v1600_v38  ;;  %v2802_v42 = vcombine.low %v1583_v37, %v1600_v38  ;;  %2961 = vmatprep.subr.bf16.mxu1 %v3342_v14 }
 0x46e   : > { %v1645_v43 = vpop.permute.xlu0 %1644 }
 0x46f   : > { %v1618_v45 = vsel %vm693_vm5, %v1613_v39, %v1615_v40  ;;  %1802 = vmatprep.subr.bf16.mxu0 %v2803_v41  ;;  %v1616_v47 = vsel %vm598_vm3, %v1614_v44, %v1615_v40  ;;  %v1648_v2 = vrot.slane %v1645_v43, 4 }
 0x470   : > { %1622 = vst [vmem:[#allocation2 + $0x38] sm:$0xf] %v1618_v45  ;;  %v1630_v46 = vpop.permute.xlu1 %1629  ;;  %1803 = vmatpush1.bf16.msra.mxu0 %v2802_v42  ;;  %v1617_v58 = vsel %vm693_vm5, %v1611_v26, %v1616_v47 }
 0x471   : > { %v1632_v50 = vrot.slane %v1630_v46, 4 }
 0x472   : > { %v1662_v62 = vpop.permute.xlu0 %1661 }
 0x473   : > { %v1633_v55 = vsel %vm598_vm3, %v1631_v48, %v1632_v50  ;;  %v1635_v56 = vsel %vm724_vm6, %v1630_v46, %v1632_v50  ;;  %v3121_v57 = vld [vmem:[#allocation2 + $0x20] ss:$12 sps:$4 sm:$0xff]   ;;  %v1665_v6 = vrot.slane %v1662_v62, 4 }
 0x474   : > { %v1634_v59 = vsel %vm724_vm6, %v1628_v33, %v1633_v55  ;;  %1639 = vst [vmem:[#allocation2 + $0x44] sm:$0xf] %v1635_v56  ;;  %v1647_v60 = vpop.permute.xlu1 %1646  ;;  %2962 = vmatpush3.bf16.msra.mxu1 %v3121_v57 }
 0x475   : > { %v1649_v63 = vrot.slane %v1647_v60, 4  ;;  %v2806_v0 = vcombine.high %v1617_v58, %v1634_v59  ;;  %v2805_v1 = vcombine.low %v1617_v58, %v1634_v59  ;;  %2963 = vmatprep.subr.bf16.mxu1 %v3342_v14  ;;  %v1899_v59 = vld [vmem:[%s4015_s11] sm:$0x7] }
 0x476   : > { %v1679_v9 = vpop.permute.xlu0 %1678 }
 0x477   : > { %v1652_v4 = vsel %vm755_vm7, %v1647_v60, %v1649_v63  ;;  %1804 = vmatprep.subr.bf16.mxu0 %v2806_v0  ;;  %v1650_v3 = vsel %vm598_vm3, %v1648_v2, %v1649_v63  ;;  %v1682_v19 = vrot.slane %v1679_v9, 4  ;;  %v1904_v60 = vrot.slane %v1899_v59, %v3618_v53 }
 0x478   : > { %1656 = vst [vmem:[#allocation2 + $0x50] sm:$0xf] %v1652_v4  ;;  %v1664_v5 = vpop.permute.xlu1 %1663  ;;  %1805 = vmatpush1.bf16.msra.mxu0 %v2805_v1  ;;  %v1651_v16 = vsel %vm755_vm7, %v1645_v43, %v1650_v3  ;;  %v1908_v63 = vrot.slane %v1899_v59, %v3621_v54  ;;  %v1912_v3 = vrot.slane %v1899_v59, %v3612_v51 }
 0x479   : > { %v1666_v7 = vrot.slane %v1664_v5, 4 }
 0x47b   : > { %v1667_v10 = vsel %vm598_vm3, %v1665_v6, %v1666_v7  ;;  %v1669_v11 = vsel %vm786_vm8, %v1664_v5, %v1666_v7  ;;  %v3122_v13 = vld [vmem:[#allocation2 + $0x38] ss:$12 sps:$4 sm:$0xff]  }
 0x47c   : > { %v1668_v17 = vsel %vm786_vm8, %v1662_v62, %v1667_v10  ;;  %1673 = vst [vmem:[#allocation2 + $0x5c] sm:$0xf] %v1669_v11  ;;  %v1681_v18 = vpop.permute.xlu1 %1680  ;;  %2964 = vmatpush3.bf16.msra.mxu1 %v3122_v13 }
 0x47d   : > { %v1683_v20 = vrot.slane %v1681_v18, 4  ;;  %v2809_v8 = vcombine.high %v1651_v16, %v1668_v17  ;;  %v2808_v21 = vcombine.low %v1651_v16, %v1668_v17  ;;  %2965 = vmatprep.subr.bf16.mxu1 %v3342_v14  ;;  %v2094_v17 = vld [vmem:[%s4014_s10] sm:$0xff] }
 0x47f   : > { %v1684_v22 = vsel %vm598_vm3, %v1682_v19, %v1683_v20  ;;  %v1686_v12 = vsel %vm817_vm9, %v1681_v18, %v1683_v20  ;;  %1806 = vmatprep.subr.bf16.mxu0 %v2809_v8 }
 0x480   : > { %v1685_v23 = vsel %vm817_vm9, %v1679_v9, %v1684_v22  ;;  %1690 = vst [vmem:[#allocation2 + $0x68] sm:$0xf] %v1686_v12  ;;  %1807 = vmatpush1.bf16.msra.mxu0 %v2808_v21 }
 0x481   : > { %v2812_v24 = vcombine.high %v1685_v23, %v1685_v23  ;;  %v2811_v25 = vcombine.low %v1685_v23, %v1685_v23 }
 0x483   : > { %v3123_v26 = vld [vmem:[#allocation2 + $0x50] ss:$12 sps:$4 sm:$0xff]   ;;  %2814 = vmatprep.subr.msk.bf16.mxu0 %vm598_vm3, %v2812_v24  ;;  %v1792_v27 = vsel %vm598_vm3, %v2811_v25, 0 }
 0x484   : > { %1809 = vmatpush1.bf16.msra.mxu0 %v1792_v27  ;;  %2966 = vmatpush3.bf16.msra.mxu1 %v3123_v26 }
 0x485   : > { %2967 = vmatprep.subr.bf16.mxu1 %v3342_v14 }
 0x487   : > { %v3124_v29 = vld [vmem:[#allocation2 + $0x68] ss:$0 sps:$4 sm:$0xff]   ;;  %2815 = vmatmul.mubr.msk.bf16.vlgmr.msra.gmra.mrb[8].mxu0 %vm1267_vm12, %v1691_v28  ;;  %v1714_v31 = vpop.permute.xlu0 %1713 }
 0x488   : > { %2216 = vmatprep.mubr.bf16.mxu0 %v3348_v15  ;;  %v1798_v30 = vsel %vm598_vm3, %v3124_v29, 0 }
 0x489   : > { %2968 = vmatpush3.bf16.msra.mxu1 %v1798_v30 }
 0x48a   : > { %2973 = vmatprep.subr.bf16.mxu1 %v3342_v14 }
 0x48c   : > { %2970 = vmatmul.mubr.msk.bf16.vlgmr.msra.gmra.mrb[8].mxu1 %vm1267_vm12, %v1691_v28 }
 0x48d   : > { %2983 = vmatprep.mubr.msk.bf16.mxu1 %vm4061_vm0, %v3342_v14 }
 0x55a   : > { %v1834_v32 = vpop.f32.mrb[8].mxu0 }
 0x55b   : > { %v1835_v33 = vadd.f32 %v1834_v32, %v1714_v31  ;;  %v1836_v34 = vpop.f32.mrb[9].mxu0 }
 0x55c   : > { %v1837_v35 = vadd.f32 %v1836_v34, %v1714_v31  ;;  %v1838_v36 = vpop.f32.mrb[10].mxu0 }
 0x55d   : > { %v1881_v37 = vsub.f32 0.0, %v1835_v33  ;;  %v1839_v38 = vpop.f32.mrb[11].mxu0 }
 0x55e   : > { %v1882_v39 = vsub.f32 0.0, %v1837_v35 }
 0x55f   : > { %v1884_v15 = vmul.f32 1.442695, %v1881_v37  ;;  %v1875_v40 = vpop.f32.mrb[8].mxu1 }
 0x560   : > { %v1886_v41 = vmul.f32 1.442695, %v1882_v39  ;;  %v1876_v42 = vadd.f32 %v1875_v40, %v1714_v31  ;;  %v2971_v43 = vpop.f32.mrb[9].mxu1 }
 0x561   : > { %3166 = vpow2.f32 %v1884_v15  ;;  %v1878_v44 = vpop.f32.mrb[10].mxu1 }
 0x562   : > { %3168 = vpow2.f32 %v1886_v41  ;;  %v1883_v45 = vsub.f32 0.0, %v1876_v42  ;;  %v2972_v46 = vpop.f32.mrb[11].mxu1 }
 0x564   : > { %v1888_v47 = vmul.f32 1.442695, %v1883_v45 }
 0x566   : > { %3170 = vpow2.f32 %v1888_v47 }
 0x56b   : > { %v3167_v48 = vpop.eup %3166 }
 0x56c   : > { %v3169_v50 = vpop.eup %3168  ;;  %v1890_v55 = vadd.f32 1.0, %v3167_v48 }
 0x56d   : > { %v1891_v56 = vadd.f32 1.0, %v3169_v50 }
 0x56e   : > { %3172 = vrcp.f32 %v1890_v55 }
 0x56f   : > { %3174 = vrcp.f32 %v1891_v56 }
 0x570   : > { %v3171_v57 = vpop.eup %3170 }
 0x571   : > { %v1892_v58 = vadd.f32 1.0, %v3171_v57 }
 0x573   : > { %3176 = vrcp.f32 %v1892_v58 }
 0x578   : > { %v3173_v62 = vpop.eup %3172 }
 0x579   : > { %v3175_v0 = vpop.eup %3174  ;;  %v1896_v1 = vmul.f32 %v3173_v62, %v1835_v33 }
 0x57a   : > { %v1897_v2 = vmul.f32 %v3175_v0, %v1837_v35 }
 0x57b   : > { %v1916_v4 = vmul.f32 %v1904_v60, %v1896_v1 }
 0x57c   : > { %v1917_v5 = vmul.f32 %v1908_v63, %v1897_v2 }
 0x57d   : > { %v3177_v6 = vpop.eup %3176 }
 0x57e   : > { %v2872_v7 = vpack.c.bf16 %v1917_v5, %v1916_v4  ;;  %v1898_v9 = vmul.f32 %v3177_v6, %v1876_v42 }
 0x580   : > { %1943 = vrot.lane.b32.xlu1 %v2872_v7, %s3339_s23  ;;  %1937 = vst [vmem:[#allocation2] sm:$0xff] %v2872_v7  ;;  %v1918_v10 = vmul.f32 %v1912_v3, %v1898_v9 }
 0x582   : > { %v2873_v11 = vpack.c.bf16 %v1918_v10, %v1918_v10 }
 0x584   : > { %1960 = vrot.lane.b32.xlu1 %v2872_v7, %s4062_s19  ;;  %1933 = vst [vmem:[#allocation3 + $0x8] sm:$0xf] %v2873_v11 }
 0x588   : > { %1977 = vrot.lane.b32.xlu1 %v2872_v7, %s3340_s26 }
 0x58b   : > { %v1940_v13 = vld [vmem:[#allocation3 + $0x8] sm:$0xff] }
 0x58c   : > { %1994 = vrot.lane.b32.xlu1 %v2872_v7, %s3341_s27  ;;  %v1936_v16 = vld [vmem:[#allocation3 + $0x8] sm:$0xf]  ;;  %1945 = vrot.lane.b32.xlu0 %v1940_v13, %s3339_s23 }
 0x58d   : > { %1938 = vst [vmem:[#allocation2 + $0x8] sm:$0xf] %v1936_v16 }
 0x590   : > { %2011 = vrot.lane.b32.xlu1 %v2872_v7, %s3343_s29  ;;  %1962 = vrot.lane.b32.xlu0 %v1940_v13, %s4062_s19  ;;  %s3350_s19 = smov [#allocation9]  }
 0x591   : > { %s3210_s20 = sshll.u32 %s3350_s19, 4  ;;  %s3211_s20 = int_to_ptr.vmem [resolvable:$false] %s3210_s20 }
 0x594   : > { %2028 = vrot.lane.b32.xlu1 %v2872_v7, %s4059_s18  ;;  %1979 = vrot.lane.b32.xlu0 %v1940_v13, %s3340_s26 }
 0x598   : > { %2045 = vrot.lane.b32.xlu1 %v2872_v7, %s3345_s30  ;;  %1996 = vrot.lane.b32.xlu0 %v1940_v13, %s3341_s27 }
 0x59c   : > { %2062 = vrot.lane.b32.xlu1 %v2872_v7, %s4060_s28  ;;  %2013 = vrot.lane.b32.xlu0 %v1940_v13, %s3343_s29  ;;  %s4063_s29 = smul.u32 24, %s3725_s21 }
 0x5a0   : > { %2097 = vperm.xlu1 %3100, %v2094_v17   ;;  %2030 = vrot.lane.b32.xlu0 %v1940_v13, %s4059_s18  ;;  %s3022_s18 = smul.u32 384, %s3459_s25 }
 0x5a2   : > { %s3902_s1 = scalar_lea.hbm %s4019_s15, %s3022_s18 }
 0x5a4   : > { %2047 = vrot.lane.b32.xlu0 %v1940_v13, %s3345_s30  ;;  %s540_s30 = scalar_lea.vmem [#allocation9], %s4063_s29  ;;  %s3909_s29 = scalar_lea.hbm %s4018_s14, %s3022_s18 }
 0x5a5   : > { %s2606_s23 = sshll.u32 %s540_s30, 4  ;;  %s3904_s23 = int_to_ptr.vmem [resolvable:$true] %s2606_s23 }
 0x5a6   : > { %s3206_s3 = scalar_lea.vmem %s3904_s23, 384  ;;  %p3213_p2 = scmp.lt.s32.totalorder %s3904_s23, %s3211_s20 }
 0x5a7   : > { %p3207_p6 = scmp.ne.s32.totalorder %s3904_s23, %s3206_s3 }
 0x5a8   : > { %2064 = vrot.lane.b32.xlu0 %v1940_v13, %s4060_s28  ;;  %s2572_s28 = sand.u32 1, %s3459_s25  }
 0x5a9   : > { %s3911_s2 = scalar_lea.sflag [#allocation10], %s2572_s28  ;;  %p3208_p10 = pnand %p3207_p6, %p4064_p9 }
 0x5ab   : > { %p3209_p12 = pneg %p3208_p10 }
 0x5f2   : > { %v1944_v18 = vpop.permute.xlu1 %1943 }
 0x5f3   : > { %v1947_v22 = vrot.slane %v1944_v18, 4 }
 0x5f6   : > { %v1961_v19 = vpop.permute.xlu1 %1960 }
 0x5f7   : > { %v1964_v28 = vrot.slane %v1961_v19, 4 }
 0x5fa   : > { %v1978_v20 = vpop.permute.xlu1 %1977 }
 0x5fb   : > { %v1981_v37 = vrot.slane %v1978_v20, 4 }
 0x5fe   : > { %v1946_v8 = vpop.permute.xlu0 %1945  ;;  %v1995_v12 = vpop.permute.xlu1 %1994 }
 0x5ff   : > { %v1948_v21 = vrot.slane %v1946_v8, 4  ;;  %v1998_v43 = vrot.slane %v1995_v12, 4 }
 0x601   : > { %v1951_v23 = vsel %vm600_vm1, %v1946_v8, %v1948_v21  ;;  %v1949_v24 = vsel %vm598_vm3, %v1947_v22, %v1948_v21 }
 0x602   : > { %1955 = vst [vmem:[#allocation2 + $0x14] sm:$0xf] %v1951_v23  ;;  %v1950_v25 = vsel %vm600_vm1, %v1944_v18, %v1949_v24  ;;  %v1963_v26 = vpop.permute.xlu0 %1962  ;;  %v2012_v35 = vpop.permute.xlu1 %2011 }
 0x603   : > { %1954 = vst [vmem:[#allocation2 + $0xc] sm:$0xff] %v1950_v25  ;;  %v1965_v27 = vrot.slane %v1963_v26, 4  ;;  %v2819_v29 = vcombine.low %v2872_v7, %v1950_v25  ;;  %v2820_v30 = vcombine.high %v2872_v7, %v1950_v25  ;;  %v2015_v57 = vrot.slane %v2012_v35, 4 }
 0x605   : > { %v1968_v31 = vsel %vm631_vm4, %v1963_v26, %v1965_v27  ;;  %v1966_v32 = vsel %vm598_vm3, %v1964_v28, %v1965_v27  ;;  %2184 = vmatprep.subr.bf16.mxu0 %v2820_v30  ;;  %v3131_v28 = vld [vmem:[#allocation5 + $0x40] sm:$0xff]  }
 0x606   : > { %1972 = vst [vmem:[#allocation2 + $0x20] sm:$0xf] %v1968_v31  ;;  %v1967_v33 = vsel %vm631_vm4, %v1961_v19, %v1966_v32  ;;  %v1980_v34 = vpop.permute.xlu0 %1979  ;;  %2185 = vmatpush1.bf16.msra.mxu0 %v2819_v29  ;;  %v2029_v46 = vpop.permute.xlu1 %2028  ;;  %v2075_v31 = vld [vmem:[%s4013_s9] sm:$0xf]  ;;  %v3133_v32 = vld [vmem:[#allocation5] sm:$0xff]  }
 0x607   : > { %1971 = vst [vmem:[#allocation2 + $0x18] sm:$0xff] %v1967_v33  ;;  %v1982_v36 = vrot.slane %v1980_v34, 4  ;;  %v2032_v2 = vrot.slane %v2029_v46, 4 }
 0x609   : > { %v1985_v38 = vsel %vm662_vm2, %v1980_v34, %v1982_v36  ;;  %v1983_v39 = vsel %vm598_vm3, %v1981_v37, %v1982_v36  ;;  %v3125_v15 = vld [vmem:[#allocation2 + $0x8] ss:$12 sps:$4 sm:$0xff]   ;;  %v3137_v37 = vld [vmem:[#allocation5 + $0x50] sm:$0xff]  }
 0x60a   : > { %1989 = vst [vmem:[#allocation2 + $0x2c] sm:$0xf] %v1985_v38  ;;  %v1984_v40 = vsel %vm662_vm2, %v1978_v20, %v1983_v39  ;;  %v1997_v41 = vpop.permute.xlu0 %1996  ;;  %2974 = vmatpush3.bf16.msra.mxu1 %v3125_v15  ;;  %v2046_v0 = vpop.permute.xlu1 %2045  ;;  %v3130_v38 = vld [vmem:[#allocation5 + $0x80] sm:$0xff]   ;;  %v3139_v39 = vld [vmem:[#allocation5 + $0x10] sm:$0xff]   ;;  %v3140_v15 = vld [vmem:[#allocation5 + $0x58] sm:$0xff]  }
 0x60b   : > { %1988 = vst [vmem:[#allocation2 + $0x24] sm:$0xff] %v1984_v40  ;;  %v1999_v42 = vrot.slane %v1997_v41, 4  ;;  %v2822_v44 = vcombine.low %v1967_v33, %v1984_v40  ;;  %v2823_v45 = vcombine.high %v1967_v33, %v1984_v40  ;;  %2975 = vmatprep.subr.bf16.mxu1 %v3342_v14  ;;  %v2049_v11 = vrot.slane %v2046_v0, 4  ;;  %v3134_v33 = vld [vmem:[#allocation5 + $0x48] sm:$0xff]  }
 0x60c   : > { %v3132_v40 = vld [vmem:[#allocation5 + $0x88] sm:$0xff]  }
 0x60d   : > { %v2002_v47 = vsel %vm693_vm5, %v1997_v41, %v1999_v42  ;;  %v2000_v48 = vsel %vm598_vm3, %v1998_v43, %v1999_v42  ;;  %2186 = vmatprep.subr.bf16.mxu0 %v2823_v45  ;;  %v3142_v41 = vld [vmem:[#allocation5 + $0x18] sm:$0xff]   ;;  %v3143_v42 = vld [vmem:[#allocation5 + $0x60] sm:$0xff]   ;;  %v3135_v43 = vld [vmem:[#allocation5 + $0x90] sm:$0xff]  }
 0x60e   : > { %2006 = vst [vmem:[#allocation2 + $0x38] sm:$0xf] %v2002_v47  ;;  %v2001_v50 = vsel %vm693_vm5, %v1995_v12, %v2000_v48  ;;  %v2014_v55 = vpop.permute.xlu0 %2013  ;;  %2187 = vmatpush1.bf16.msra.mxu0 %v2822_v44  ;;  %v2063_v13 = vpop.permute.xlu1 %2062  ;;  %v3145_v44 = vld [vmem:[#allocation5 + $0x20] sm:$0xff]   ;;  %v3138_v45 = vld [vmem:[#allocation5 + $0x98] sm:$0xff]   ;;  %v3144_v47 = vld [vmem:[#allocation5 + $0xa8] sm:$0xff]  }
 0x60f   : > { %2005 = vst [vmem:[#allocation2 + $0x30] sm:$0xff] %v2001_v50  ;;  %v2016_v56 = vrot.slane %v2014_v55, 4  ;;  %v2066_v21 = vrot.slane %v2063_v13, 4  ;;  %v3146_v48 = vld [vmem:[#allocation5 + $0x68] sm:$0xff]  }
 0x611   : > { %v2019_v58 = vsel %vm724_vm6, %v2014_v55, %v2016_v56  ;;  %v2017_v59 = vsel %vm598_vm3, %v2015_v57, %v2016_v56  ;;  %v3126_v60 = vld [vmem:[#allocation2 + $0x20] ss:$12 sps:$4 sm:$0xff]   ;;  %v3152_v57 = vld [vmem:[#allocation5 + $0x78] sm:$0xff]  }
 0x612   : > { %2023 = vst [vmem:[#allocation2 + $0x44] sm:$0xf] %v2019_v58  ;;  %v2018_v62 = vsel %vm724_vm6, %v2012_v35, %v2017_v59  ;;  %v2031_v63 = vpop.permute.xlu0 %2030  ;;  %2976 = vmatpush3.bf16.msra.mxu1 %v3126_v60  ;;  %v3136_v35 = vld [vmem:[#allocation5 + $0x8] sm:$0xff]   ;;  %v3149_v55 = vld [vmem:[#allocation5 + $0x70] sm:$0xff]   ;;  %v3153_v59 = vld [vmem:[#allocation5 + $0x38] sm:$0xff]  }
 0x613   : > { %v2033_v1 = vrot.slane %v2031_v63, 4  ;;  %v2825_v4 = vcombine.low %v2001_v50, %v2018_v62  ;;  %v2826_v5 = vcombine.high %v2001_v50, %v2018_v62  ;;  %2977 = vmatprep.subr.bf16.mxu1 %v3342_v14  ;;  %v3148_v50 = vld [vmem:[#allocation5 + $0x28] sm:$0xff]   ;;  %v3151_v56 = vld [vmem:[#allocation5 + $0x30] sm:$0xff]   ;;  %v3150_v60 = vld [vmem:[#allocation5 + $0xb8] sm:$0xff]  }
 0x614   : > { %v3147_v58 = vld [vmem:[#allocation5 + $0xb0] sm:$0xff]  }
 0x615   : > { %v2036_v3 = vsel %vm755_vm7, %v2031_v63, %v2033_v1  ;;  %v2034_v6 = vsel %vm598_vm3, %v2032_v2, %v2033_v1  ;;  %2188 = vmatprep.subr.bf16.mxu0 %v2826_v5  ;;  %v2268_v62 = vld [vmem:[%s4016_s12] sm:$0x7] }
 0x616   : > { %2040 = vst [vmem:[#allocation2 + $0x50] sm:$0xf] %v2036_v3  ;;  %v2035_v7 = vsel %vm755_vm7, %v2029_v46, %v2034_v6  ;;  %v2048_v9 = vpop.permute.xlu0 %2047  ;;  %2189 = vmatpush1.bf16.msra.mxu0 %v2825_v4  ;;  %v3141_v46 = vld [vmem:[#allocation5 + $0xa0] sm:$0xff]   ;;  %v2273_v2 = vrot.slane %v2268_v62, %v3618_v53  ;;  %v2277_v3 = vrot.slane %v2268_v62, %v3621_v54 }
 0x617   : > { %v2050_v10 = vrot.slane %v2048_v9, 4 }
 0x619   : > { %v2053_v16 = vsel %vm786_vm8, %v2048_v9, %v2050_v10  ;;  %v2051_v17 = vsel %vm598_vm3, %v2049_v11, %v2050_v10  ;;  %v3127_v18 = vld [vmem:[#allocation2 + $0x38] ss:$12 sps:$4 sm:$0xff]  }
 0x61a   : > { %2057 = vst [vmem:[#allocation2 + $0x5c] sm:$0xf] %v2053_v16  ;;  %v2052_v19 = vsel %vm786_vm8, %v2046_v0, %v2051_v17  ;;  %v2065_v20 = vpop.permute.xlu0 %2064  ;;  %2978 = vmatpush3.bf16.msra.mxu1 %v3127_v18  ;;  %v2281_v17 = vrot.slane %v2268_v62, %v3612_v51 }
 0x61b   : > { %v2067_v8 = vrot.slane %v2065_v20, 4  ;;  %v2828_v22 = vcombine.low %v2035_v7, %v2052_v19  ;;  %v2829_v12 = vcombine.high %v2035_v7, %v2052_v19  ;;  %2979 = vmatprep.subr.bf16.mxu1 %v3342_v14 }
 0x61d   : > { %v2070_v23 = vsel %vm817_vm9, %v2065_v20, %v2067_v8  ;;  %v2068_v24 = vsel %vm598_vm3, %v2066_v21, %v2067_v8  ;;  %2190 = vmatprep.subr.bf16.mxu0 %v2829_v12 }
 0x61e   : > { %2074 = vst [vmem:[#allocation2 + $0x68] sm:$0xf] %v2070_v23  ;;  %v2069_v25 = vsel %vm817_vm9, %v2063_v13, %v2068_v24  ;;  %2191 = vmatpush1.bf16.msra.mxu0 %v2828_v22 }
 0x61f   : > { %v2832_v26 = vcombine.high %v2069_v25, %v2069_v25  ;;  %v2831_v27 = vcombine.low %v2069_v25, %v2069_v25  ;;  %v2098_v63 = vpop.permute.xlu1 %2097 }
 0x621   : > { %v3128_v29 = vld [vmem:[#allocation2 + $0x50] ss:$12 sps:$4 sm:$0xff]   ;;  %2834 = vmatprep.subr.msk.bf16.mxu0 %vm598_vm3, %v2832_v26  ;;  %v2176_v30 = vsel %vm598_vm3, %v2831_v27, 0 }
 0x622   : > { %2193 = vmatpush1.bf16.msra.mxu0 %v2176_v30  ;;  %2980 = vmatpush3.bf16.msra.mxu1 %v3128_v29 }
 0x623   : > { %2898 = vmatprep.subr.bf16.mxu0 %v3131_v28  ;;  %2981 = vmatprep.subr.bf16.mxu1 %v3342_v14 }
 0x625   : > { %v3129_v34 = vld [vmem:[#allocation2 + $0x68] ss:$0 sps:$4 sm:$0xff]   ;;  %2835 = vmatmul.mubr.msk.bf16.vlgmr.msra.gmra.mrb[12].mxu0 %vm1267_vm12, %v2075_v31 }
 0x626   : > { %2899 = vmatpush3.bf16.msra.mxu0 %v3133_v32  ;;  %v2182_v36 = vsel %vm598_vm3, %v3129_v34, 0 }
 0x627   : > { %2900 = vmatprep.subr.bf16.mxu0 %v3134_v33  ;;  %2982 = vmatpush3.bf16.msra.mxu1 %v2182_v36 }
 0x628   : > { %2987 = vmatprep.subr.bf16.mxu1 %v3342_v14 }
 0x62a   : > { %2901 = vmatpush3.bf16.msra.mxu0 %v3136_v35  ;;  %2984 = vmatmul.mubr.msk.bf16.vlgmr.msra.gmra.mrb[12].mxu1 %vm1267_vm12, %v2075_v31 }
 0x62b   : > { %2902 = vmatprep.subr.bf16.mxu0 %v3137_v37  ;;  %2988 = vmatpush3.bf16.msra.mxu1 %v3130_v38 }
 0x62c   : > { %3003 = vmatprep.mubr.msk.bf16.mxu1 %vm4061_vm0, %v3342_v14  ;;  %2989 = vmatprep.subr.bf16.mxu1 %v3342_v14 }
 0x62e   : > { %2903 = vmatpush3.bf16.msra.mxu0 %v3139_v39 }
 0x62f   : > { %2904 = vmatprep.subr.bf16.mxu0 %v3140_v15  ;;  %2990 = vmatpush3.bf16.msra.mxu1 %v3132_v40 }
 0x630   : > { %2991 = vmatprep.subr.bf16.mxu1 %v3342_v14 }
 0x632   : > { %2905 = vmatpush3.bf16.msra.mxu0 %v3142_v41 }
 0x633   : > { %2906 = vmatprep.subr.bf16.mxu0 %v3143_v42  ;;  %2992 = vmatpush3.bf16.msra.mxu1 %v3135_v43 }
 0x634   : > { %2993 = vmatprep.subr.bf16.mxu1 %v3342_v14 }
 0x636   : > { %2907 = vmatpush3.bf16.msra.mxu0 %v3145_v44 }
 0x637   : > { %2994 = vmatpush3.bf16.msra.mxu1 %v3138_v45  ;;  %2908 = vmatprep.subr.bf16.mxu0 %v3146_v48 }
 0x638   : > { %2995 = vmatprep.subr.bf16.mxu1 %v3342_v14 }
 0x63a   : > { %2909 = vmatpush3.bf16.msra.mxu0 %v3148_v50 }
 0x63b   : > { %2996 = vmatpush3.bf16.msra.mxu1 %v3141_v46  ;;  %2910 = vmatprep.subr.bf16.mxu0 %v3149_v55 }
 0x63c   : > { %2997 = vmatprep.subr.bf16.mxu1 %v3342_v14 }
 0x63e   : > { %2911 = vmatpush3.bf16.msra.mxu0 %v3151_v56 }
 0x63f   : > { %2998 = vmatpush3.bf16.msra.mxu1 %v3144_v47  ;;  %2912 = vmatprep.subr.bf16.mxu0 %v3152_v57 }
 0x640   : > { %2999 = vmatprep.subr.bf16.mxu1 %v3342_v14 }
 0x642   : > { %2913 = vmatpush3.bf16.msra.mxu0 %v3153_v59 }
 0x643   : > { %3000 = vmatpush3.bf16.msra.mxu1 %v3147_v58 }
 0x644   : > { %3001 = vmatprep.subr.bf16.mxu1 %v3342_v14 }
 0x647   : > { %3002 = vmatpush3.bf16.msra.mxu1 %v3150_v60 }
 0x6f8   : > { %v2218_v0 = vpop.f32.mrb[12].mxu0 }
 0x6f9   : > { %v2219_v1 = vadd.f32 %v2218_v0, %v2098_v63  ;;  %v2220_v4 = vpop.f32.mrb[13].mxu0 }
 0x6fa   : > { %v2221_v5 = vadd.f32 %v2220_v4, %v2098_v63  ;;  %v2222_v6 = vpop.f32.mrb[14].mxu0 }
 0x6fb   : > { %v2265_v7 = vadd.f32 %v2219_v1, %v3733_v49  ;;  %v2223_v14 = vpop.f32.mrb[15].mxu0 }
 0x6fc   : > { %v2266_v9 = vadd.f32 %v2221_v5, %v3735_v52 }
 0x6fd   : > { %v2285_v10 = vmul.f32 %v2273_v2, %v2265_v7  ;;  %v2259_v11 = vpop.f32.mrb[12].mxu1 }
 0x6fe   : > { %v2286_v13 = vmul.f32 %v2277_v3, %v2266_v9  ;;  %v2260_v16 = vadd.f32 %v2259_v11, %v2098_v63  ;;  %v2985_v53 = vpop.f32.mrb[13].mxu1 }
 0x6ff   : > { %2288 = vst [vmem:[%s540_s30] sm:$0xff] %v2285_v10  ;;  %v2262_v54 = vpop.f32.mrb[14].mxu1  ;;  %v2291_v19 = vpack.c.bf16 %v2285_v10, %v2285_v10 }
 0x700   : > { %2289 = vst [vmem:[%s540_s30 + $0x8] sm:$0xff] %v2286_v13  ;;  %v2292_v18 = vpack.c.bf16 %v2286_v13, %v2286_v13  ;;  %v2267_v49 = vadd.f32 %v2260_v16, %v3748_v61  ;;  %v2986_v20 = vpop.f32.mrb[15].mxu1 }
 0x702   : > { %2518 = vmatprep.mubr.bf16.mxu0 %v2292_v18  ;;  %v2287_v52 = vmul.f32 %v2281_v17, %v2267_v49 }
 0x703   : > { %2519 = vmatmul.mubr.bf16.vlgmr.msra.gmra.mrb[16].mxu0 %v2291_v19 }
 0x704   : > { %2290 = vst [vmem:[%s540_s30 + $0x10] sm:$0xff] %v2287_v52  ;;  %v2293_v8 = vpack.c.bf16 %v2287_v52, %v2287_v52  ;;  %s3212_s30 = scalar_lea.vmem %s3211_s20, 768 }
 0x705   : > { %p3214_p3 = scmp.lt.s32.totalorder %s3212_s30, %s3206_s3 }
 0x706   : > { %3004 = vmatmul.mubr.bf16.vlgmr.msra.gmra.mrb[16].mxu1 %v2293_v8 }
 0x707   : > { %p3215_p4 = por %p3214_p3, %p3213_p2 }
 0x709   : > { %p3216_p7 = pnand %p3215_p4, %p3209_p12 }
 0x70b   : > { %3219 = shalt.err (!%p3216_p7)
}
 0x70c   : > { %s3220_s18 = scalar_lea.hbm %s3902_s1, 384  ;;  %s3224_s27 = scalar_lea.hbm %s4019_s15, 768 }
 0x70d   : > { %p3221_p8 = scmp.ne.s32.totalorder %s3902_s1, %s3220_s18  ;;  %p3225_p1 = scmp.lt.u32.totalorder %s3902_s1, %s4019_s15 }
 0x70e   : > { %p3226_p0 = scmp.lt.u32.totalorder %s3224_s27, %s3220_s18  ;;  %p3228_p6 = scmp.lt.u32.totalorder %s3220_s18, %s3902_s1 }
 0x70f   : > { %p3222_p11 = pnand %p3221_p8, %p4064_p9 }
 0x710   : > { %p3227_p5 = por %p3226_p0, %p3225_p1 }
 0x711   : > { %p3223_p13 = pneg %p3222_p11 }
 0x712   : > { %p3229_p10 = por %p3228_p6, %p3227_p5 }
 0x714   : > { %p3230_p12 = pnand %p3229_p10, %p3223_p13 }
 0x716   : > { %3233 = shalt.err (!%p3230_p12)
}
 0x717   : > { %3029 = dma.vmem_to_hbm [thread:$0]  (%p4064_p9), %s3904_s23, 384, %s3902_s1, %s3911_s2  }
 0x718   : > { %s2592_s3 = sshll.u32 %s3740_s17, 4  ;;  %s2568_s30 = scalar_lea.sflag [#allocation7], %s3725_s21  ;;  %s2593_s3 = int_to_ptr.vmem [resolvable:$true] %s2592_s3 }
 0x719   : > { %s3234_s28 = scalar_lea.vmem %s2593_s3, 384  ;;  %s3351_s18 = smov [#allocation8]  }
 0x71a   : > { %p3235_p2 = scmp.ne.s32.totalorder %s2593_s3, %s3234_s28  ;;  %s3238_s26 = sshll.u32 %s3351_s18, 4  ;;  %s3239_s26 = int_to_ptr.vmem [resolvable:$false] %s3238_s26 }
 0x71b   : > { %s3240_s27 = scalar_lea.vmem %s3239_s26, 768  ;;  %p3241_p7 = scmp.lt.s32.totalorder %s2593_s3, %s3239_s26 }
 0x71c   : > { %p3236_p3 = pnand %p3235_p2, %p4064_p9  ;;  %p3242_p8 = scmp.lt.s32.totalorder %s3240_s27, %s3234_s28 }
 0x71e   : > { %p3237_p4 = pneg %p3236_p3  ;;  %p3243_p11 = por %p3242_p8, %p3241_p7 }
 0x720   : > { %p3244_p13 = pnand %p3243_p11, %p3237_p4 }
 0x722   : > { %3247 = shalt.err (!%p3244_p13)
}
 0x723   : > { %s3248_s17 = scalar_lea.hbm %s3909_s29, 384  ;;  %s3252_s19 = scalar_lea.hbm %s4018_s14, 768 }
 0x724   : > { %p3249_p1 = scmp.ne.s32.totalorder %s3909_s29, %s3248_s17  ;;  %p3253_p6 = scmp.lt.u32.totalorder %s3909_s29, %s4018_s14 }
 0x725   : > { %p3254_p10 = scmp.lt.u32.totalorder %s3252_s19, %s3248_s17  ;;  %p3256_p2 = scmp.lt.u32.totalorder %s3248_s17, %s3909_s29 }
 0x726   : > { %p3250_p0 = pnand %p3249_p1, %p4064_p9 }
 0x727   : > { %p3255_p12 = por %p3254_p10, %p3253_p6 }
 0x728   : > { %p3251_p5 = pneg %p3250_p0 }
 0x729   : > { %p3257_p3 = por %p3256_p2, %p3255_p12 }
 0x72b   : > { %p3258_p4 = pnand %p3257_p3, %p3251_p5 }
 0x72d   : > { %3261 = shalt.err (!%p3258_p4)
}
 0x72e   : > { %3028 = dma.vmem_to_hbm [thread:$0]  (%p4064_p9), %s2593_s3, 384, %s3909_s29, %s2568_s30  }
 0x72f   : > { %s2757_s28 = sshll.u32 %s3725_s21, 3  ;;  %s2864_s26 = sshll.u32 %s3459_s25, 7 }
 0x730   : > { %s547_s27 = scalar_lea.vmem [#allocation11], %s2757_s28  ;;  %s3959_s19 = scalar_lea.hbm %s4020_s16, %s2864_s26 }
 0x731   : > { %s2619_s1 = sshll.u32 %s547_s27, 4  ;;  %s3352_s21 = smov [#allocation11]   ;;  %s3961_s1 = int_to_ptr.vmem [resolvable:$true] %s2619_s1 }
 0x732   : > { %s3262_s25 = scalar_lea.vmem %s3961_s1, 128  ;;  %s3266_s29 = sshll.u32 %s3352_s21, 4  ;;  %s3267_s29 = int_to_ptr.vmem [resolvable:$false] %s3266_s29 }
 0x733   : > { %p3263_p7 = scmp.ne.s32.totalorder %s3961_s1, %s3262_s25  ;;  %s3268_s3 = scalar_lea.vmem %s3267_s29, 256 }
 0x734   : > { %p3269_p13 = scmp.lt.s32.totalorder %s3961_s1, %s3267_s29  ;;  %p3270_p1 = scmp.lt.s32.totalorder %s3268_s3, %s3262_s25 }
 0x735   : > { %p3264_p8 = pnand %p3263_p7, %p4064_p9 }
 0x736   : > { %p3271_p0 = por %p3270_p1, %p3269_p13 }
 0x737   : > { %p3265_p11 = pneg %p3264_p8 }
 0x739   : > { %p3272_p5 = pnand %p3271_p0, %p3265_p11 }
 0x7d6   : > { %v2914_v51 = vpop.f32.mrb[16].mxu0 }
 0x7d7   : > { %v2915_v61 = vpop.f32.mrb[17].mxu0 }
 0x7d8   : > { %v2916_v21 = vadd.f32 %v2915_v61, %v2914_v51  ;;  %v2917_v22 = vpop.f32.mrb[18].mxu0 }
 0x7d9   : > { %v2918_v12 = vpop.f32.mrb[19].mxu0  ;;  %v2560_v23 = vpop.f32.mrb[16].mxu1 }
 0x7da   : > { %v3005_v24 = vpop.f32.mrb[17].mxu1  ;;  %v2561_v25 = vadd.f32 %v2916_v21, %v2560_v23 }
 0x7db   : > { %v2563_v26 = vpop.f32.mrb[18].mxu1 }
 0x7dc   : > { %v3006_v27 = vpop.f32.mrb[19].mxu1  ;;  %2566 = vst [vmem:[%s547_s27] sm:$0xff] %v2561_v25 }
 0x7dd   : > { %3275 = shalt.err (!%p3272_p5)
}
 0x7de   : > { %s3276_s30 = scalar_lea.hbm %s3959_s19, 128  ;;  %s3280_s28 = scalar_lea.hbm %s4020_s16, 256 }
 0x7df   : > { %p3277_p6 = scmp.ne.s32.totalorder %s3959_s19, %s3276_s30  ;;  %p3281_p2 = scmp.lt.u32.totalorder %s3959_s19, %s4020_s16 }
 0x7e0   : > { %p3282_p3 = scmp.lt.u32.totalorder %s3280_s28, %s3276_s30  ;;  %p3284_p7 = scmp.lt.u32.totalorder %s3276_s30, %s3959_s19 }
 0x7e1   : > { %p3278_p10 = pnand %p3277_p6, %p4064_p9 }
 0x7e2   : > { %p3283_p4 = por %p3282_p3, %p3281_p2 }
 0x7e3   : > { %p3279_p12 = pneg %p3278_p10 }
 0x7e4   : > { %p3285_p8 = por %p3284_p7, %p3283_p4 }
 0x7e6   : > { %p3286_p11 = pnand %p3285_p8, %p3279_p12 }
 0x7e8   : > { %3289 = shalt.err (!%p3286_p11)
}
 0x7e9   : > { %3030 = dma.vmem_to_hbm [thread:$0]  (%p4064_p9), %s3961_s1, 128, %s3959_s19, %s3911_s2  }
 0x7ea PF: > { %s4065_s17 = sld [smem:[#allocation15_spill]]  ;;  %s4066_s23 = sld [smem:[#allocation19_spill]] }
 0x7eb   : > { %p3050_p13 = scmp.ge.s32.totalorder %s3332_s24, 2 }
 0x7f0   : > { %s2631_s25 = sand.u32 1, %s4065_s17   ;;  %p4067_p1 = scmp.ne.s32.totalorder %s4066_s23, 0 }
 0x7f1   : > { %s2632_s21 = scalar_lea.sflag [#allocation7], %s2631_s25 }
 0x7f2   : > { %p3039_p0 = pnand %p3050_p13, %p4067_p1 }
 0x7f4   : > { %3311 = dma.done.wait (!%p3039_p0), %s2632_s21, 384  }
 0x7f5   : > { %3313 = vsyncadd (!%p3039_p0), %s2632_s21, 4294966912  ;;  %s4068_s29 = sadd.s32 4294967294, %s3332_s24  }
 0x7f6   : > { %s2640_s3 = sand.u32 1, %s4068_s29  }
 0x7f7   : > { %s2641_s30 = scalar_lea.sflag [#allocation10], %s2640_s3 }
 0x7f8   : > { %3315 = dma.done.wait (!%p3039_p0), %s2641_s30, 512  }
 0x7f9   : > { %3317 = vsyncadd (!%p3039_p0), %s2641_s30, 4294966784  ;;  %s4069_s24 = sld [smem:[#allocation17_spill]]  ;;  %s4070_s2 = sld [smem:[#allocation16_spill]] }
 0x7fa   : > { %s4071_s23 = sld [smem:[#allocation18_spill]]  ;;  %s4072_s21 = smov %s3324_s22 }
 0x7ff   : > { %p31_p9 = scmp.ge.s32.totalorder %s4069_s24, 4   ;;  %s4073_s22 = smov %s4070_s2 }
 0x801   :  { %33 = sbr.rel (!%p31_p9) target bundleno = 11 (0xb), region = 148 }
 0x808   :  { %2655 = vsyncpa [#allocation6], 1 }
 0x809   :  { %2657 = vsyncpa [#allocation6 + $0x1], 1 }
 0x80a   :  { %2658 = vsyncpa [#allocation7], 1 }
 0x80b   :  { %2660 = vsyncpa [#allocation7 + $0x1], 1 }
 0x80c   :  { %2661 = vsyncpa [#allocation10], 1 }
 0x80d   :  { %2663 = vsyncpa [#allocation10 + $0x1], 1 }

</bundles_post_ra>
